<compile_context>
chip_gen: v5e
topology: v5e:2x2
jax: 0.10.0
libtpu: 0.0.40
codegen_flags: <defaults>
</compile_context>

<pallas_src>
import jax
import jax.numpy as jnp
from jax import lax
from jax.experimental import pallas as pl
from jax.experimental.pallas import tpu as pltpu


def pose_forward_pallas(x_nchw, w1, b1, w2, b2):
    """x_nchw: (N, Cin, H, W) f32 -> heatmaps (N, K, H, W) f32."""
    N, Cin, H, W = x_nchw.shape
    KH = KW = 3
    Cfeat = w1.shape[-1]
    K = w2.shape[-1]

    Wp = W + 2                 # padded row width (conv pad=1 both sides)
    L = H * Wp                 # output rows per image (incl. 2 junk cols/row)
    S = (H + 3) * Wp           # input rows per image (pad 1 top, 2 bottom)

    # ---- wrapper glue: NCHW -> NHWC, spatial zero-pad, flatten, bf16 cast ----
    x_nhwc = jnp.transpose(x_nchw, (0, 2, 3, 1))
    xp = jnp.pad(x_nhwc, ((0, 0), (1, 2), (1, 1), (0, 0)))        # (N, H+3, Wp, Cin)
    xf = xp.reshape(N, S, Cin).astype(jnp.bfloat16)                # HBM read is bf16

    w1_r = w1.reshape(KH * KW, Cin, Cfeat).astype(jnp.bfloat16)   # (9, Cin, Cfeat)
    b1_r = b1.reshape(1, Cfeat).astype(jnp.float32)
    w2_r = w2.astype(jnp.bfloat16)                                  # (Cfeat, K)
    b2_r = b2.reshape(1, K).astype(jnp.float32)

    # Row offset of each 3x3 shift inside the flattened padded image.
    offsets = tuple(dy * Wp + dx for dy in range(KH) for dx in range(KW))

    def kernel(x_ref, w1_ref, b1_ref, w2_ref, b2_ref, out_ref):
        # One full (S, Cin) bf16 image tile per grid step.  The +-1 row/col
        # shifts land on non-8-aligned sublane offsets, so we take the shifted
        # slices on an f32 vreg copy (plain sublane shifts) and cast each
        # slice back to bf16 right before the MXU.  HBM traffic stays bf16.
        x32 = x_ref[0].astype(jnp.float32)                          # (S, Cin)

        # Fused im2col: 9 shifted (L, Cin) x (Cin, Cfeat) bf16 dots, f32 acc.
        acc = jnp.zeros((L, Cfeat), jnp.float32)
        for s, off in enumerate(offsets):          # static, unrolled at trace
            xs = lax.slice(x32, (off, 0), (off + L, Cin)).astype(jnp.bfloat16)
            acc += jnp.dot(xs, w1_ref[s], preferred_element_type=jnp.float32)

        # Backbone bias + ReLU on the f32 accumulator; neck = identity.
        feat = jnp.maximum(acc + b1_ref[...], 0.0)

        # Head 1x1 conv: bf16 matmul with f32 accumulation, then bias.
        out = jnp.dot(feat.astype(jnp.bfloat16), w2_ref[...],
                      preferred_element_type=jnp.float32) + b2_ref[...]
        out_ref[0] = out.astype(out_ref.dtype)

    # Honest (unpadded) cost estimate.
    flops = 2 * N * L * (KH * KW * Cin * Cfeat + Cfeat * K)
    bytes_accessed = (xf.size * 2 + w1_r.size * 2 + w2_r.size * 2
                      + b1_r.size * 4 + b2_r.size * 4 + N * L * K * 4)

    out = pl.pallas_call(
        kernel,
        out_shape=jax.ShapeDtypeStruct((N, L, K), jnp.float32),
        grid_spec=pltpu.PrefetchScalarGridSpec(
            num_scalar_prefetch=0,
            grid=(N,),                                   # one image per step
            in_specs=[
                pl.BlockSpec((1, S, Cin), lambda n: (n, 0, 0)),
                pl.BlockSpec((KH * KW, Cin, Cfeat), lambda n: (0, 0, 0)),
                pl.BlockSpec((1, Cfeat), lambda n: (0, 0)),
                pl.BlockSpec((Cfeat, K), lambda n: (0, 0)),
                pl.BlockSpec((1, K), lambda n: (0, 0)),
            ],
            out_specs=pl.BlockSpec((1, L, K), lambda n: (n, 0, 0)),
        ),
        compiler_params=pltpu.CompilerParams(
            dimension_semantics=("parallel",)),
        cost_estimate=pl.CostEstimate(
            flops=flops, transcendentals=0, bytes_accessed=bytes_accessed),
    )(xf, w1_r, b1_r, w2_r, b2_r)

    # ---- wrapper glue: drop the 2 junk columns per row, back to NCHW ----
    out = out.reshape(N, H, Wp, K)[:, :, :W, :]
    return jnp.transpose(out, (0, 3, 1, 2))


# ----------------------------- pure-JAX reference ----------------------------
def pose_forward_ref(x_nchw, w1, b1, w2, b2):
    N, Cin, H, W = x_nchw.shape
    x_nhwc = jnp.transpose(x_nchw, (0, 2, 3, 1))
    xp = jnp.pad(x_nhwc, ((0, 0), (1, 1), (1, 1), (0, 0)))
    patches = jnp.concatenate(
        [xp[:, dy:dy + H, dx:dx + W, :] for dy in range(3) for dx in range(3)],
        axis=-1,
    ).reshape(N * H * W, -1)
    feat = jnp.maximum(patches @ w1 + b1, 0.0)
    out = feat @ w2 + b2
    return jnp.transpose(out.reshape(N, H, W, -1), (0, 3, 1, 2))


# ----------------------------------- main ------------------------------------
if __name__ == "__main__":
    key = jax.random.PRNGKey(0)
    N, Cin, H, W = 2, 4, 16, 16
    Cfeat, K = 32, 17  # backbone feature channels, num keypoints

    k_x, k_w1, k_b1, k_w2, k_b2 = jax.random.split(key, 5)
    x = jax.random.normal(k_x, (N, Cin, H, W), dtype=jnp.float32)

    # Deterministic synthetic parameters (backbone 3x3 conv, head 1x1 conv),
    # stored in matmul layout: w1 (9*Cin, Cfeat), w2 (Cfeat, K).
    w1 = 0.1 * jax.random.normal(k_w1, (3 * 3 * Cin, Cfeat), dtype=jnp.float32)
    b1 = 0.1 * jax.random.normal(k_b1, (1, Cfeat), dtype=jnp.float32)
    w2 = 0.1 * jax.random.normal(k_w2, (Cfeat, K), dtype=jnp.float32)
    b2 = 0.1 * jax.random.normal(k_b2, (1, K), dtype=jnp.float32)

    fwd = jax.jit(pose_forward_pallas)
    out = jax.block_until_ready(fwd(x, w1, b1, w2, b2))

    ref = pose_forward_ref(x, w1, b1, w2, b2)
    assert out.shape == (N, K, H, W)
    max_err = float(jnp.max(jnp.abs(out - ref)))
    # bf16 operands -> loosened tolerance vs the pure-f32 reference.
    assert jnp.allclose(out, ref, atol=2e-2, rtol=2e-2), max_err

    # TODO(synk): original module's forward() is abstract (`pass`); this
    # implements the canonical backbone->neck->head heatmap pipeline it builds.
    print("KERNEL_OK")
</pallas_src>

<mosaic_0001>
module attributes {stable_mosaic.version = 11 : i64} {
  func.func @kernel(%arg0: i32, %arg1: memref<1x342x4xbf16, #tpu.memory_space<vmem>>, %arg2: memref<9x4x32xbf16, #tpu.memory_space<vmem>>, %arg3: memref<1x32xf32, #tpu.memory_space<vmem>>, %arg4: memref<32x17xbf16, #tpu.memory_space<vmem>>, %arg5: memref<1x17xf32, #tpu.memory_space<vmem>>, %arg6: memref<1x288x17xf32, #tpu.memory_space<vmem>>) attributes {dimension_semantics = [#tpu.dimension_semantics<parallel>], iteration_bounds = array<i64: 2>, scalar_prefetch = 0 : i64, scratch_operands = 0 : i64, tpu.core_type = #tpu.core_type<tc>, window_params = [{transform_indices = @transform_0, window_bounds = array<i64: 1, 342, 4>}, {pipeline_mode = #tpu.pipeline_mode<synchronous>, transform_indices = @transform_1, window_bounds = array<i64: 9, 4, 32>}, {pipeline_mode = #tpu.pipeline_mode<synchronous>, transform_indices = @transform_2, window_bounds = array<i64: 1, 32>}, {pipeline_mode = #tpu.pipeline_mode<synchronous>, transform_indices = @transform_3, window_bounds = array<i64: 32, 17>}, {pipeline_mode = #tpu.pipeline_mode<synchronous>, transform_indices = @transform_4, window_bounds = array<i64: 1, 17>}, {transform_indices = @transform_5, window_bounds = array<i64: 1, 288, 17>}]} {
    %c0 = arith.constant 0 : index
    %c0_0 = arith.constant 0 : index
    %c0_1 = arith.constant 0 : index
    %0 = vector.load %arg1[%c0, %c0_0, %c0_1] : memref<1x342x4xbf16, #tpu.memory_space<vmem>>, vector<1x342x4xbf16>
    %1 = vector.shape_cast %0 : vector<1x342x4xbf16> to vector<342x4xbf16>
    %2 = arith.extf %1 : vector<342x4xbf16> to vector<342x4xf32>
    %cst = arith.constant 0.000000e+00 : f32
    %3 = vector.broadcast %cst : f32 to vector<288x32xf32>
    %4 = vector.extract_strided_slice %2 {offsets = [0, 0], sizes = [288, 4], strides = [1, 1]} : vector<342x4xf32> to vector<288x4xf32>
    %5 = arith.truncf %4 : vector<288x4xf32> to vector<288x4xbf16>
    %c0_2 = arith.constant 0 : index
    %c0_3 = arith.constant 0 : index
    %c0_4 = arith.constant 0 : index
    %6 = vector.load %arg2[%c0_2, %c0_3, %c0_4] : memref<9x4x32xbf16, #tpu.memory_space<vmem>>, vector<1x4x32xbf16>
    %7 = vector.shape_cast %6 : vector<1x4x32xbf16> to vector<4x32xbf16>
    %cst_5 = arith.constant dense<0.000000e+00> : vector<288x32xf32>
    %8 = tpu.matmul %5, %7, %cst_5 {dimension_numbers = #tpu.dot_dimension_numbers<[1], [0], [0], [1], [0, 0, 1, 1], [], []>} : vector<288x4xbf16>, vector<4x32xbf16>, vector<288x32xf32> -> vector<288x32xf32>
    %9 = arith.addf %3, %8 : vector<288x32xf32>
    %10 = vector.extract_strided_slice %2 {offsets = [1, 0], sizes = [288, 4], strides = [1, 1]} : vector<342x4xf32> to vector<288x4xf32>
    %11 = arith.truncf %10 : vector<288x4xf32> to vector<288x4xbf16>
    %c1 = arith.constant 1 : index
    %c0_6 = arith.constant 0 : index
    %c0_7 = arith.constant 0 : index
    %12 = vector.load %arg2[%c1, %c0_6, %c0_7] : memref<9x4x32xbf16, #tpu.memory_space<vmem>>, vector<1x4x32xbf16>
    %13 = vector.shape_cast %12 : vector<1x4x32xbf16> to vector<4x32xbf16>
    %cst_8 = arith.constant dense<0.000000e+00> : vector<288x32xf32>
    %14 = tpu.matmul %11, %13, %cst_8 {dimension_numbers = #tpu.dot_dimension_numbers<[1], [0], [0], [1], [0, 0, 1, 1], [], []>} : vector<288x4xbf16>, vector<4x32xbf16>, vector<288x32xf32> -> vector<288x32xf32>
    %15 = arith.addf %9, %14 : vector<288x32xf32>
    %16 = vector.extract_strided_slice %2 {offsets = [2, 0], sizes = [288, 4], strides = [1, 1]} : vector<342x4xf32> to vector<288x4xf32>
    %17 = arith.truncf %16 : vector<288x4xf32> to vector<288x4xbf16>
    %c2 = arith.constant 2 : index
    %c0_9 = arith.constant 0 : index
    %c0_10 = arith.constant 0 : index
    %18 = vector.load %arg2[%c2, %c0_9, %c0_10] : memref<9x4x32xbf16, #tpu.memory_space<vmem>>, vector<1x4x32xbf16>
    %19 = vector.shape_cast %18 : vector<1x4x32xbf16> to vector<4x32xbf16>
    %cst_11 = arith.constant dense<0.000000e+00> : vector<288x32xf32>
    %20 = tpu.matmul %17, %19, %cst_11 {dimension_numbers = #tpu.dot_dimension_numbers<[1], [0], [0], [1], [0, 0, 1, 1], [], []>} : vector<288x4xbf16>, vector<4x32xbf16>, vector<288x32xf32> -> vector<288x32xf32>
    %21 = arith.addf %15, %20 : vector<288x32xf32>
    %22 = vector.extract_strided_slice %2 {offsets = [18, 0], sizes = [288, 4], strides = [1, 1]} : vector<342x4xf32> to vector<288x4xf32>
    %23 = arith.truncf %22 : vector<288x4xf32> to vector<288x4xbf16>
    %c3 = arith.constant 3 : index
    %c0_12 = arith.constant 0 : index
    %c0_13 = arith.constant 0 : index
    %24 = vector.load %arg2[%c3, %c0_12, %c0_13] : memref<9x4x32xbf16, #tpu.memory_space<vmem>>, vector<1x4x32xbf16>
    %25 = vector.shape_cast %24 : vector<1x4x32xbf16> to vector<4x32xbf16>
    %cst_14 = arith.constant dense<0.000000e+00> : vector<288x32xf32>
    %26 = tpu.matmul %23, %25, %cst_14 {dimension_numbers = #tpu.dot_dimension_numbers<[1], [0], [0], [1], [0, 0, 1, 1], [], []>} : vector<288x4xbf16>, vector<4x32xbf16>, vector<288x32xf32> -> vector<288x32xf32>
    %27 = arith.addf %21, %26 : vector<288x32xf32>
    %28 = vector.extract_strided_slice %2 {offsets = [19, 0], sizes = [288, 4], strides = [1, 1]} : vector<342x4xf32> to vector<288x4xf32>
    %29 = arith.truncf %28 : vector<288x4xf32> to vector<288x4xbf16>
    %c4 = arith.constant 4 : index
    %c0_15 = arith.constant 0 : index
    %c0_16 = arith.constant 0 : index
    %30 = vector.load %arg2[%c4, %c0_15, %c0_16] : memref<9x4x32xbf16, #tpu.memory_space<vmem>>, vector<1x4x32xbf16>
    %31 = vector.shape_cast %30 : vector<1x4x32xbf16> to vector<4x32xbf16>
    %cst_17 = arith.constant dense<0.000000e+00> : vector<288x32xf32>
    %32 = tpu.matmul %29, %31, %cst_17 {dimension_numbers = #tpu.dot_dimension_numbers<[1], [0], [0], [1], [0, 0, 1, 1], [], []>} : vector<288x4xbf16>, vector<4x32xbf16>, vector<288x32xf32> -> vector<288x32xf32>
    %33 = arith.addf %27, %32 : vector<288x32xf32>
    %34 = vector.extract_strided_slice %2 {offsets = [20, 0], sizes = [288, 4], strides = [1, 1]} : vector<342x4xf32> to vector<288x4xf32>
    %35 = arith.truncf %34 : vector<288x4xf32> to vector<288x4xbf16>
    %c5 = arith.constant 5 : index
    %c0_18 = arith.constant 0 : index
    %c0_19 = arith.constant 0 : index
    %36 = vector.load %arg2[%c5, %c0_18, %c0_19] : memref<9x4x32xbf16, #tpu.memory_space<vmem>>, vector<1x4x32xbf16>
    %37 = vector.shape_cast %36 : vector<1x4x32xbf16> to vector<4x32xbf16>
    %cst_20 = arith.constant dense<0.000000e+00> : vector<288x32xf32>
    %38 = tpu.matmul %35, %37, %cst_20 {dimension_numbers = #tpu.dot_dimension_numbers<[1], [0], [0], [1], [0, 0, 1, 1], [], []>} : vector<288x4xbf16>, vector<4x32xbf16>, vector<288x32xf32> -> vector<288x32xf32>
    %39 = arith.addf %33, %38 : vector<288x32xf32>
    %40 = vector.extract_strided_slice %2 {offsets = [36, 0], sizes = [288, 4], strides = [1, 1]} : vector<342x4xf32> to vector<288x4xf32>
    %41 = arith.truncf %40 : vector<288x4xf32> to vector<288x4xbf16>
    %c6 = arith.constant 6 : index
    %c0_21 = arith.constant 0 : index
    %c0_22 = arith.constant 0 : index
    %42 = vector.load %arg2[%c6, %c0_21, %c0_22] : memref<9x4x32xbf16, #tpu.memory_space<vmem>>, vector<1x4x32xbf16>
    %43 = vector.shape_cast %42 : vector<1x4x32xbf16> to vector<4x32xbf16>
    %cst_23 = arith.constant dense<0.000000e+00> : vector<288x32xf32>
    %44 = tpu.matmul %41, %43, %cst_23 {dimension_numbers = #tpu.dot_dimension_numbers<[1], [0], [0], [1], [0, 0, 1, 1], [], []>} : vector<288x4xbf16>, vector<4x32xbf16>, vector<288x32xf32> -> vector<288x32xf32>
    %45 = arith.addf %39, %44 : vector<288x32xf32>
    %46 = vector.extract_strided_slice %2 {offsets = [37, 0], sizes = [288, 4], strides = [1, 1]} : vector<342x4xf32> to vector<288x4xf32>
    %47 = arith.truncf %46 : vector<288x4xf32> to vector<288x4xbf16>
    %c7 = arith.constant 7 : index
    %c0_24 = arith.constant 0 : index
    %c0_25 = arith.constant 0 : index
    %48 = vector.load %arg2[%c7, %c0_24, %c0_25] : memref<9x4x32xbf16, #tpu.memory_space<vmem>>, vector<1x4x32xbf16>
    %49 = vector.shape_cast %48 : vector<1x4x32xbf16> to vector<4x32xbf16>
    %cst_26 = arith.constant dense<0.000000e+00> : vector<288x32xf32>
    %50 = tpu.matmul %47, %49, %cst_26 {dimension_numbers = #tpu.dot_dimension_numbers<[1], [0], [0], [1], [0, 0, 1, 1], [], []>} : vector<288x4xbf16>, vector<4x32xbf16>, vector<288x32xf32> -> vector<288x32xf32>
    %51 = arith.addf %45, %50 : vector<288x32xf32>
    %52 = vector.extract_strided_slice %2 {offsets = [38, 0], sizes = [288, 4], strides = [1, 1]} : vector<342x4xf32> to vector<288x4xf32>
    %53 = arith.truncf %52 : vector<288x4xf32> to vector<288x4xbf16>
    %c8 = arith.constant 8 : index
    %c0_27 = arith.constant 0 : index
    %c0_28 = arith.constant 0 : index
    %54 = vector.load %arg2[%c8, %c0_27, %c0_28] : memref<9x4x32xbf16, #tpu.memory_space<vmem>>, vector<1x4x32xbf16>
    %55 = vector.shape_cast %54 : vector<1x4x32xbf16> to vector<4x32xbf16>
    %cst_29 = arith.constant dense<0.000000e+00> : vector<288x32xf32>
    %56 = tpu.matmul %53, %55, %cst_29 {dimension_numbers = #tpu.dot_dimension_numbers<[1], [0], [0], [1], [0, 0, 1, 1], [], []>} : vector<288x4xbf16>, vector<4x32xbf16>, vector<288x32xf32> -> vector<288x32xf32>
    %57 = arith.addf %51, %56 : vector<288x32xf32>
    %c0_30 = arith.constant 0 : index
    %c0_31 = arith.constant 0 : index
    %58 = vector.load %arg3[%c0_30, %c0_31] : memref<1x32xf32, #tpu.memory_space<vmem>>, vector<1x32xf32>
    %59 = vector.broadcast %58 : vector<1x32xf32> to vector<288x32xf32>
    %60 = arith.addf %57, %59 : vector<288x32xf32>
    %cst_32 = arith.constant 0.000000e+00 : f32
    %61 = vector.broadcast %cst_32 : f32 to vector<288x32xf32>
    %62 = arith.maximumf %60, %61 : vector<288x32xf32>
    %63 = arith.truncf %62 : vector<288x32xf32> to vector<288x32xbf16>
    %c0_33 = arith.constant 0 : index
    %c0_34 = arith.constant 0 : index
    %64 = vector.load %arg4[%c0_33, %c0_34] : memref<32x17xbf16, #tpu.memory_space<vmem>>, vector<32x17xbf16>
    %cst_35 = arith.constant dense<0.000000e+00> : vector<288x17xf32>
    %65 = tpu.matmul %63, %64, %cst_35 {dimension_numbers = #tpu.dot_dimension_numbers<[1], [0], [0], [1], [0, 0, 1, 1], [], []>} : vector<288x32xbf16>, vector<32x17xbf16>, vector<288x17xf32> -> vector<288x17xf32>
    %c0_36 = arith.constant 0 : index
    %c0_37 = arith.constant 0 : index
    %66 = vector.load %arg5[%c0_36, %c0_37] : memref<1x17xf32, #tpu.memory_space<vmem>>, vector<1x17xf32>
    %67 = vector.broadcast %66 : vector<1x17xf32> to vector<288x17xf32>
    %68 = arith.addf %65, %67 : vector<288x17xf32>
    %c0_38 = arith.constant 0 : index
    %c0_39 = arith.constant 0 : index
    %c0_40 = arith.constant 0 : index
    %69 = vector.load %arg6[%c0_38, %c0_39, %c0_40] : memref<1x288x17xf32, #tpu.memory_space<vmem>>, vector<1x288x17xf32>
    %70 = vector.shape_cast %69 : vector<1x288x17xf32> to vector<288x17xf32>
    %71 = vector.shape_cast %68 : vector<288x17xf32> to vector<1x288x17xf32>
    tpu.vector_store %arg6[%c0_38, %c0_39, %c0_40], %71 {strides = array<i32>} : memref<1x288x17xf32, #tpu.memory_space<vmem>>, vector<1x288x17xf32>,
    return
  }
  func.func @transform_0(%arg0: i32) -> (i32, i32, i32) {
    %c0_i32 = arith.constant 0 : i32
    %c0_i32_0 = arith.constant 0 : i32
    %c0_i32_1 = arith.constant 0 : i32
    return %arg0, %c0_i32, %c0_i32_0 : i32, i32, i32
  }
  func.func @transform_1(%arg0: i32) -> (i32, i32, i32) {
    %c0_i32 = arith.constant 0 : i32
    %c0_i32_0 = arith.constant 0 : i32
    %c0_i32_1 = arith.constant 0 : i32
    %c0_i32_2 = arith.constant 0 : i32
    return %c0_i32, %c0_i32_0, %c0_i32_1 : i32, i32, i32
  }
  func.func @transform_2(%arg0: i32) -> (i32, i32) {
    %c0_i32 = arith.constant 0 : i32
    %c0_i32_0 = arith.constant 0 : i32
    %c0_i32_1 = arith.constant 0 : i32
    return %c0_i32, %c0_i32_0 : i32, i32
  }
  func.func @transform_3(%arg0: i32) -> (i32, i32) {
    %c0_i32 = arith.constant 0 : i32
    %c0_i32_0 = arith.constant 0 : i32
    %c0_i32_1 = arith.constant 0 : i32
    return %c0_i32, %c0_i32_0 : i32, i32
  }
  func.func @transform_4(%arg0: i32) -> (i32, i32) {
    %c0_i32 = arith.constant 0 : i32
    %c0_i32_0 = arith.constant 0 : i32
    %c0_i32_1 = arith.constant 0 : i32
    return %c0_i32, %c0_i32_0 : i32, i32
  }
  func.func @transform_5(%arg0: i32) -> (i32, i32, i32) {
    %c0_i32 = arith.constant 0 : i32
    %c0_i32_0 = arith.constant 0 : i32
    %c0_i32_1 = arith.constant 0 : i32
    return %arg0, %c0_i32, %c0_i32_0 : i32, i32, i32
  }
}

</mosaic_0001>

<bundles_post_ra>
// kernel: pose_forward_pallas.1
= control target key start
LH: loop header
LB: loop body
LE: loop exit
PB: predicated region body
PF: predicated region fallthrough
CT: control target
= control target key end

     0   :  { %s3094_s18 = smov 0   ;;  %s4294_s0 = inlined_call_operand.vmem [shape: bf16[2,342,4], index: 0, kind: input, shape index: {}]   ;;  %s4295_s1 = inlined_call_operand.vmem [shape: bf16[9,4,32], index: 1, kind: input, shape index: {}]   ;;  %s4296_s2 = inlined_call_operand.vmem [shape: f32[1,32], index: 2, kind: input, shape index: {}]   ;;  %s4297_s3 = inlined_call_operand.vmem [shape: bf16[32,17], index: 3, kind: input, shape index: {}]   ;;  %s4298_s4 = inlined_call_operand.vmem [shape: f32[1,17], index: 4, kind: input, shape index: {}]   ;;  %s4299_s5 = inlined_call_operand.vmem [shape: f32[2,288,17], index: 5, kind: output, shape index: {}]  }
   0x1 LB: > { %s2718_s19 = sadd.s32 4294967295, %s3062_s18   ;;  %p2722_p0 = scmp.ge.s32.totalorder %s3062_s18, 1  ;;  %s3062_s18 = sphi %s3094_s18, %s15_s18  }
   0x2   : > { %p187_p1 = scmp.lt.s32.totalorder %s3062_s18, 3 }
   0x4   : > { %p188_p2 = pnand %p2722_p0, %p187_p1 }
   0x6   : > { %191 = sbr.rel (%p188_p2) target bundleno = 1018 (0x3fa), region = 40 }
   0xb   : > { %v326_v0 = vld [vmem:[%s4295_s1] sm:$0x3]  ;;  %vm534_vm0 = vcmask 1041408   ;;  %p215_p3 = scmp.lt.s32.totalorder %s2718_s19, 1  ;;  %v2797_v2 = vld [vmem:[%s4295_s1 + $0x2] sm:$0x3] }
   0xc   : > { %v674_v1 = vsel %vm534_vm0, %v326_v0, 0  ;;  %v536_v3 = vsel %vm534_vm0, %v2797_v2, 0  ;;  %v2834_v4 = vld [vmem:[%s4295_s1 + $0x4] sm:$0x3]  ;;  %v2853_v5 = vld [vmem:[%s4295_s1 + $0x6] sm:$0x3] }
   0xd   : > { %3026 = vmatpush.bf16.msra.mxu3 %v674_v1  ;;  %s4490_s19 = smov (!%p215_p3, %s2718_s19), 1  ;;  %683 = vmatpush.bf16.msra.mxu1 %v674_v1  ;;  %v889_v6 = vsel %vm534_vm0, %v2834_v4, 0  ;;  %v1043_v7 = vsel %vm534_vm0, %v2853_v5, 0  ;;  %v2872_v8 = vld [vmem:[%s4295_s1 + $0x8] sm:$0x3]  ;;  %vm479_vm1 = vcmask 31744  }
   0xe   : > { %3025 = vmatpush.bf16.msra.mxu2 %v536_v3  ;;  %545 = vmatpush.bf16.msra.mxu0 %v536_v3  ;;  %s3027_s30 = smul.u32 172, %s4490_s19  ;;  %v1323_v9 = vsel %vm534_vm0, %v2872_v8, 0  ;;  %vm330_vm2 = vsmask.f32 7424  ;;  %vm796_vm3 = vcmask 1046528   ;;  %vm1462_vm4 = vcmask 1045504  }
   0xf   : > { %vm1182_vm5 = vsmask.f32 6400  ;;  %vm1848_vm6 = vsmask.f32 5376  ;;  %vm2128_vm7 = vcmask 1044480   ;;  %vm2472_vm8 = vcmask 261120  }
  0x10   : > { %s3128_s8 = scalar_lea.vmem %s4294_s0, %s3027_s30  ;;  %s3028_s25 = smul.u32 288, %s4490_s19  ;;  %vm2626_vm9 = vcmask 138240  }
  0x11   : > { %1052 = vmatpush.bf16.msrb.mxu3 %v1043_v7  ;;  %v3131_v10 = vld [vmem:[%s3128_s8 + $0x48] sm:$0xff]  ;;  %v3134_v11 = vld [vmem:[%s3128_s8 + $0x50] sm:$0xff]  ;;  %v3137_v12 = vld [vmem:[%s3128_s8] sm:$0xff] }
  0x12   : > { %898 = vmatpush.bf16.msrb.mxu2 %v889_v6  ;;  %1332 = vmatpush.bf16.msrb.mxu0 %v1323_v9  ;;  %v3140_v13 = vld [vmem:[%s3128_s8 + $0x8] sm:$0xff]  ;;  %v3145_v14 = vshll.u32 %v3131_v10, 16  ;;  %v3148_v15 = vshrl.u32 %v3131_v10, 16  ;;  %v3151_v16 = vshll.u32 %v3134_v11, 16  ;;  %v332_v17 = vshrl.u32 %v3137_v12, 16  ;;  %v3170_v28 = vld [vmem:[%s3128_s8 + $0x58] sm:$0xff]  ;;  %s4127_s30 = scalar_lea.vmem %s4299_s5, %s3028_s25 }
  0x13   : > { %2825 = vmatmul.msk.bf16.vlgmr.msra.gmra.mxu3 %vm479_vm1, %v3131_v10  ;;  %2816 = vmatmul.msk.bf16.vlgmr.msra.gmra.mxu1 %vm479_vm1, %v3137_v12  ;;  %v334_v18 = vshll.u32 %v3137_v12, 16  ;;  %v4300_v19 = vshll.u32 %v3140_v13, 16  ;;  %v3173_v29 = vld [vmem:[%s3128_s8 + $0x10] sm:$0xff]  ;;  %v3176_v30 = vshrl.u32 %v3134_v11, 16  ;;  %v3179_v31 = vshll.u32 %v3170_v28, 16  ;;  %v3199_v40 = vld [vmem:[%s3128_s8 + $0x60] sm:$0xff] }
  0x14   : > { %4343 = vst [vmem:[#allocation2_spill] sm:$0xff] %v3145_v14  ;;  %v4302_v20 = vrot.slane %v3145_v14, 1  ;;  %v413_v21 = vrot.slane %v3151_v16, 1  ;;  %v4301_v32 = vshrl.u32 %v3140_v13, 16  ;;  %v3183_v33 = vshll.u32 %v3173_v29, 16  ;;  %v3202_v41 = vld [vmem:[%s3128_s8 + $0x18] sm:$0xff] }
  0x15   : > { %4344 = vst [vmem:[#allocation3_spill] sm:$0xff] %v3151_v16  ;;  %v336_v22 = vrot.slane %v334_v18, 1  ;;  %v341_v23 = vrot.slane %v4300_v19, 1  ;;  %v421_v35 = vrot.slane %v3179_v31, 1  ;;  %v3205_v42 = vshrl.u32 %v3170_v28, 16  ;;  %v3229_v52 = vld [vmem:[%s3128_s8 + $0x68] sm:$0xff] }
  0x16   : > { %v409_v24 = vor.u32 %v3148_v15, %v4302_v20  ;;  %4345 = vst [vmem:[#allocation4_spill] sm:$0xff] %v3176_v30  ;;  %v417_v34 = vor.u32 %v3176_v30, %v413_v21  ;;  %v349_v37 = vrot.slane %v3183_v33, 1  ;;  %v3208_v43 = vshll.u32 %v3199_v40, 16  ;;  %v3232_v53 = vld [vmem:[%s3128_s8 + $0x20] sm:$0xff]  ;;  %v3259_v0 = vld [vmem:[%s3128_s8 + $0x70] sm:$0xff]  ;;  %v3262_v1 = vld [vmem:[%s3128_s8 + $0x28] sm:$0xff] }
  0x17   : > { %v337_v25 = vor.u32 %v336_v22, %v332_v17  ;;  %4346 = vst [vmem:[#allocation5_spill] sm:$0xff] %v3179_v31  ;;  %v345_v36 = vor.u32 %v4301_v32, %v341_v23  ;;  %v3211_v44 = vshrl.u32 %v3173_v29, 16  ;;  %v3214_v45 = vshll.u32 %v3202_v41, 16  ;;  %v3292_v22 = vld [vmem:[%s3128_s8 + $0x30] sm:$0xff] }
  0x18   : > { %v414_v26 = vsel %vm330_vm2, %v409_v24, %v413_v21  ;;  %4347 = vst [vmem:[#allocation6_spill] sm:$0xff] %v3183_v33  ;;  %v422_v38 = vsel %vm330_vm2, %v417_v34, %v421_v35  ;;  %v425_v46 = vor.u32 %v3205_v42, %v421_v35  ;;  %v429_v47 = vrot.slane %v3208_v43, 1  ;;  %v3289_v21 = vld [vmem:[%s3128_s8 + $0x78] sm:$0xff] }
  0x19   : > { %2807 = vmatmul.msk.bf16.vlgmr.msra.gmra.mxu2 %vm479_vm1, %v414_v26  ;;  %v342_v27 = vsel %vm330_vm2, %v337_v25, %v341_v23  ;;  %v350_v39 = vsel %vm330_vm2, %v345_v36, %v349_v37  ;;  %4348 = vst [vmem:[#allocation7_spill] sm:$0xff] %v3205_v42  ;;  %v353_v48 = vor.u32 %v3211_v44, %v349_v37  ;;  %v357_v49 = vrot.slane %v3214_v45, 1 }
  0x1a   : > { %2798 = vmatmul.msk.bf16.vlgmr.msra.gmra.mxu0 %vm479_vm1, %v342_v27  ;;  %4349 = vst [vmem:[#allocation8_spill] sm:$0xff] %v3211_v44  ;;  %v430_v50 = vsel %vm330_vm2, %v425_v46, %v429_v47  ;;  %v3235_v54 = vshrl.u32 %v3199_v40, 16  ;;  %v3238_v55 = vshll.u32 %v3229_v52, 16  ;;  %v3241_v56 = vshrl.u32 %v3202_v41, 16  ;;  %v3322_v46 = vld [vmem:[%s3128_s8 + $0x38] sm:$0xff] }
  0x1b   : > { %v358_v51 = vsel %vm330_vm2, %v353_v48, %v357_v49  ;;  %v3244_v57 = vshll.u32 %v3232_v53, 16  ;;  %v3265_v2 = vshrl.u32 %v3229_v52, 16  ;;  %v3268_v3 = vshll.u32 %v3259_v0, 16 }
  0x1c   : > { %v433_v58 = vor.u32 %v3235_v54, %v429_v47  ;;  %v437_v59 = vrot.slane %v3238_v55, 1  ;;  %v361_v60 = vor.u32 %v3241_v56, %v357_v49  ;;  %v3271_v4 = vshrl.u32 %v3232_v53, 16 }
  0x1d   : > { %4350 = vst [vmem:[#allocation9_spill] sm:$0xff] %v3244_v57  ;;  %v365_v61 = vrot.slane %v3244_v57, 1  ;;  %v3274_v5 = vshll.u32 %v3262_v1, 16  ;;  %v445_v7 = vrot.slane %v3268_v3, 1  ;;  %v3295_v23 = vshrl.u32 %v3259_v0, 16 }
  0x1e   : > { %v438_v62 = vsel %vm330_vm2, %v433_v58, %v437_v59  ;;  %v441_v6 = vor.u32 %v3265_v2, %v437_v59  ;;  %v3298_v24 = vshll.u32 %v3289_v21, 16  ;;  %v3301_v25 = vshrl.u32 %v3262_v1, 16 }
  0x1f   : > { %v366_v63 = vsel %vm330_vm2, %v361_v60, %v365_v61  ;;  %4351 = vst [vmem:[#allocation10_spill] sm:$0xff] %v3274_v5  ;;  %v369_v8 = vor.u32 %v3271_v4, %v365_v61  ;;  %v373_v9 = vrot.slane %v3274_v5, 1  ;;  %v3304_v26 = vshll.u32 %v3292_v22, 16 }
  0x20   : > { %v446_v17 = vsel %vm330_vm2, %v441_v6, %v445_v7  ;;  %v449_v27 = vor.u32 %v3295_v23, %v445_v7  ;;  %v453_v34 = vrot.slane %v3298_v24, 1  ;;  %v3325_v47 = vshrl.u32 %v3289_v21, 16  ;;  %v3352_v6 = vld [vmem:[%s3128_s8 + $0x40] sm:$0xff] }
  0x21   : > { %v374_v18 = vsel %vm330_vm2, %v369_v8, %v373_v9  ;;  %4352 = vst [vmem:[#allocation11_spill] sm:$0xff] %v3304_v26  ;;  %v377_v35 = vor.u32 %v3301_v25, %v373_v9  ;;  %v381_v36 = vrot.slane %v3304_v26, 1  ;;  %v3331_v49 = vshrl.u32 %v3292_v22, 16 }
  0x22   : > { %v454_v37 = vsel %vm330_vm2, %v449_v27, %v453_v34  ;;  %v3361_v9 = vshrl.u32 %v3322_v46, 16 }
  0x23   : > { %2826 = vmatmul.msk.bf16.gmra.mxu3 %vm479_vm1, %v3134_v11  ;;  %2817 = vmatmul.msk.bf16.gmra.mxu1 %vm479_vm1, %v3140_v13  ;;  %v385_v59 = vor.u32 %v3331_v49, %v381_v36 }
  0x29   : > { %2808 = vmatmul.msk.bf16.gmra.mxu2 %vm479_vm1, %v422_v38  ;;  %v382_v38 = vsel %vm330_vm2, %v377_v35, %v381_v36  ;;  %v3375_v36 = vld [vmem:[%s3128_s8 + $0x90] sm:$0xff]  }
  0x2a   : > { %2799 = vmatmul.msk.bf16.gmra.mxu0 %vm479_vm1, %v350_v39  ;;  %v3319_v39 = vld [vmem:[%s3128_s8 + $0x80] sm:$0xff]  ;;  %4360 = vst [vmem:[#allocation19_spill] sm:$0xff] %v3375_v36 }
  0x2b   : > { %4353 = vst [vmem:[#allocation12_spill] sm:$0xff] %v3319_v39  ;;  %v3328_v48 = vshll.u32 %v3319_v39, 16  ;;  %v3355_v7 = vshrl.u32 %v3319_v39, 16 }
  0x2d   : > { %4354 = vst [vmem:[#allocation13_spill] sm:$0xff] %v3328_v48  ;;  %v461_v58 = vrot.slane %v3328_v48, 1  ;;  %v1186_v48 = vrot.slane %v3211_v44, 1 }
  0x2e   : > { %4357 = vst [vmem:[#allocation16_spill] sm:$0xff] %v3355_v7 }
  0x33   : > { %2827 = vmatmul.msk.bf16.gmra.mxu3 %vm479_vm1, %v3170_v28  ;;  %2818 = vmatmul.msk.bf16.gmra.mxu1 %vm479_vm1, %v3173_v29 }
  0x39   : > { %2809 = vmatmul.msk.bf16.gmra.mxu2 %vm479_vm1, %v430_v50  ;;  %v3334_v50 = vshll.u32 %v3322_v46, 16 }
  0x3a   : > { %2800 = vmatmul.msk.bf16.gmra.mxu0 %vm479_vm1, %v358_v51  ;;  %v457_v51 = vor.u32 %v3325_v47, %v453_v34 }
  0x3b   : > { %4355 = vst [vmem:[#allocation14_spill] sm:$0xff] %v3334_v50  ;;  %v389_v60 = vrot.slane %v3334_v50, 1 }
  0x3c   : > { %v462_v61 = vsel %vm330_vm2, %v457_v51, %v461_v58 }
  0x3d   : > { %v393_v34 = vor.u32 %v3361_v9, %v389_v60 }
  0x43   : > { %2828 = vmatmul.msk.bf16.gmra.mxu3 %vm479_vm1, %v3199_v40  ;;  %2819 = vmatmul.msk.bf16.gmra.mxu1 %vm479_vm1, %v3202_v41 }
  0x49   : > { %2810 = vmatmul.msk.bf16.gmra.mxu2 %vm479_vm1, %v438_v62  ;;  %v390_v62 = vsel %vm330_vm2, %v385_v59, %v389_v60 }
  0x4a   : > { %2801 = vmatmul.msk.bf16.gmra.mxu0 %vm479_vm1, %v366_v63  ;;  %v3349_v63 = vld [vmem:[%s3128_s8 + $0x88] sm:$0xff] }
  0x4b   : > { %4356 = vst [vmem:[#allocation15_spill] sm:$0xff] %v3349_v63  ;;  %v3358_v8 = vshll.u32 %v3349_v63, 16 }
  0x4d   : > { %4358 = vst [vmem:[#allocation17_spill] sm:$0xff] %v3358_v8  ;;  %v469_v27 = vrot.slane %v3358_v8, 1 }
  0x53   : > { %2829 = vmatmul.msk.bf16.gmra.mxu3 %vm479_vm1, %v3229_v52  ;;  %2820 = vmatmul.msk.bf16.gmra.mxu1 %vm479_vm1, %v3232_v53 }
  0x59   : > { %2811 = vmatmul.msk.bf16.gmra.mxu2 %vm479_vm1, %v446_v17  ;;  %v3364_v17 = vshll.u32 %v3352_v6, 16 }
  0x5a   : > { %2802 = vmatmul.msk.bf16.gmra.mxu0 %vm479_vm1, %v374_v18  ;;  %v465_v18 = vor.u32 %v3355_v7, %v461_v58  ;;  %v2910_v58 = vld [vmem:[%s4295_s1 + $0xc] sm:$0x3]  ;;  %v1187_v7 = vrot.slane %v3183_v33, 2 }
  0x5b   : > { %4359 = vst [vmem:[#allocation18_spill] sm:$0xff] %v3364_v17  ;;  %v397_v35 = vrot.slane %v3364_v17, 1  ;;  %v1709_v60 = vsel %vm534_vm0, %v2910_v58, 0 }
  0x5c   : > { %1718 = vmatpush.bf16.msra.mxu2 %v1709_v60 }
  0x5d   : > { %v398_v51 = vsel %vm330_vm2, %v393_v34, %v397_v35 }
  0x63   : > { %2830 = vmatmul.msk.bf16.gmra.mxu3 %vm479_vm1, %v3259_v0  ;;  %2821 = vmatmul.msk.bf16.gmra.mxu1 %vm479_vm1, %v3262_v1 }
  0x69   : > { %2812 = vmatmul.msk.bf16.gmra.mxu2 %vm479_vm1, %v454_v37  ;;  %v470_v37 = vsel %vm330_vm2, %v465_v18, %v469_v27  ;;  %v3393_v18 = vshrl.u32 %v3349_v63, 16 }
  0x6a   : > { %2803 = vmatmul.msk.bf16.gmra.mxu0 %vm479_vm1, %v382_v38  ;;  %v3017_v38 = vunpack.c.l.bf16 %v3375_v36 }
  0x6b   : > { %4362 = vst [vmem:[#allocation21_spill] sm:$0xff] %v3393_v18  ;;  %v473_v60 = vor.u32 %v3393_v18, %v469_v27  ;;  %v4363_v27 = vrot.slane %v3145_v14, 1  ;;  %v4366_v18 = vshll.u32 %v3140_v13, 16 }
  0x6c   : > { %v3385_v59 = vpack.c.bf16 %v3017_v38, %v3017_v38  ;;  %v2891_v38 = vld [vmem:[%s4295_s1 + $0xa] sm:$0x3] }
  0x6d   : > { %v1555_v58 = vsel %vm534_vm0, %v2891_v38, 0 }
  0x6e   : > { %4361 = vst [vmem:[#allocation20_spill] sm:$0xff] %v3385_v59  ;;  %v475_v34 = vshll.u32 %v3385_v59, 16  ;;  %1564 = vmatpush.bf16.msrb.mxu1 %v1555_v58  ;;  %v800_v58 = vrot.slane %v3173_v29, 1 }
  0x73   : > { %2831 = vmatmul.msk.bf16.gmra.mxu3 %vm479_vm1, %v3289_v21  ;;  %2822 = vmatmul.msk.bf16.gmra.mxu1 %vm479_vm1, %v3292_v22 }
  0x79   : > { %2813 = vmatmul.msk.bf16.gmra.mxu2 %vm479_vm1, %v462_v61  ;;  %v2929_v61 = vld [vmem:[%s4295_s1 + $0xe] sm:$0x3] }
  0x7a   : > { %2804 = vmatmul.msk.bf16.gmra.mxu0 %vm479_vm1, %v390_v62  ;;  %v1989_v62 = vsel %vm534_vm0, %v2929_v61, 0  ;;  %v477_v61 = vrot.slane %v475_v34, 1 }
  0x7b   : > { %1998 = vmatpush.bf16.msra.mxu3 %v1989_v62  ;;  %v2948_v62 = vld [vmem:[%s4295_s1 + $0x10] sm:$0x3] }
  0x7c   : > { %v2221_v32 = vsel %vm534_vm0, %v2948_v62, 0  ;;  %v478_v20 = vsel %vm330_vm2, %v473_v60, %v477_v61  ;;  %v1464_v60 = vrot.slane %v3173_v29, 2 }
  0x7d   : > { %2230 = vmatpush.bf16.msra.mxu0 %v2221_v32  ;;  %v1463_v32 = vrot.slane %v3140_v13, 2 }
  0x7f   : > { %v1465_v29 = vsel %vm1462_vm4, %v1463_v32, %v1464_v60 }
  0x83   : > { %2832 = vmatmul.msk.bf16.gmra.mxu3 %vm479_vm1, %v3319_v39  ;;  %2823 = vmatmul.msk.bf16.gmra.mxu1 %vm479_vm1, %v3322_v46 }
  0x89   : > { %2814 = vmatmul.msk.bf16.gmra.mxu2 %vm479_vm1, %v470_v37 }
  0x8a   : > { %2805 = vmatmul.msk.bf16.gmra.mxu0 %vm479_vm1, %v398_v51  ;;  %v3397_v51 = vshrl.u32 %v3352_v6, 16 }
  0x8c   : > { %v401_v19 = vor.u32 %v3397_v51, %v397_v35  ;;  %v798_v35 = vrot.slane %v3140_v13, 1 }
  0x8e   : > { %v406_v34 = vsel %vm330_vm2, %v401_v19, %v4363_v27 }
  0x90   : > { %v685_v37 = vpop.f32.mrf.mxu1 }
  0x93   : > { %2833 = vmatmul.msk.bf16.gmra.mxu3 %vm479_vm1, %v3349_v63  ;;  %2824 = vmatmul.msk.bf16.gmra.mxu1 %vm479_vm1, %v3352_v6  ;;  %v1184_v63 = vrot.slane %v4366_v18, 2 }
  0x96   : > { %v730_v38 = vpop.f32.mrf.mxu3 }
  0x97   : > { %v547_v59 = vpop.f32.mrf.mxu0 }
  0x98   : > { %v687_v36 = vpop.f32.mrf.mxu1  ;;  %v3417_v8 = vadd.f32 %v685_v37, %v547_v59  ;;  %v801_v59 = vsel %vm796_vm3, %v798_v35, %v800_v58 }
  0x99   : > { %2815 = vmatmul.msk.bf16.gmra.mxu2 %vm479_vm1, %v478_v20  ;;  %v4365_v20 = vshrl.u32 %v3140_v13, 16 }
  0x9a   : > { %2806 = vmatmul.msk.bf16.gmra.mxu0 %vm479_vm1, %v406_v34 }
  0x9b   : > { %v1183_v37 = vrot.slane %v4365_v20, 1  ;;  %v1188_v20 = vor.u32 %v1187_v7, %v1186_v48  ;;  %v1466_v48 = vrot.slane %v3202_v41, 2 }
  0x9c   : > { %v592_v61 = vpop.f32.mrf.mxu2 }
  0x9d   : > { %v3425_v62 = vadd.f32 %v730_v38, %v592_v61  ;;  %v797_v38 = vrot.slane %v3137_v12, 1  ;;  %v1185_v61 = vor.u32 %v1184_v63, %v1183_v37  ;;  %v802_v12 = vrot.slane %v3202_v41, 1 }
  0x9e   : > { %v732_v19 = vpop.f32.mrf.mxu3 }
  0x9f   : > { %4364 = vst [vmem:[#allocation22_spill] sm:$0xff] %v3425_v62  ;;  %v549_v27 = vpop.f32.mrf.mxu0  ;;  %v799_v44 = vsel %vm796_vm3, %v797_v38, %v798_v35  ;;  %v1189_v32 = vsel %vm1182_vm5, %v1185_v61, %v1188_v20  ;;  %v803_v35 = vsel %vm796_vm3, %v800_v58, %v802_v12 }
  0xa0   : > { %v690_v34 = vpop.f32.mrf.mxu1  ;;  %v3435_v39 = vadd.f32 %v687_v36, %v549_v27 }
  0xa3   : > { %2854 = vmatmul.msk.bf16.vlgmr.msrb.gmra.mxu3 %vm479_vm1, %v801_v59  ;;  %2892 = vmatmul.msk.bf16.vlgmr.msrb.gmra.mxu1 %vm479_vm1, %v1465_v29  ;;  %v1190_v29 = vrot.slane %v3241_v56, 1 }
  0xa4   : > { %v594_v62 = vpop.f32.mrf.mxu2 }
  0xa5   : > { %v3440_v13 = vadd.f32 %v732_v19, %v594_v62 }
  0xa6   : > { %v735_v18 = vpop.f32.mrf.mxu3 }
  0xa7   : > { %v552_v33 = vpop.f32.mrf.mxu0 }
  0xa8   : > { %v692_v36 = vpop.f32.mrf.mxu1  ;;  %v3444_v27 = vadd.f32 %v690_v34, %v552_v33  ;;  %v1191_v33 = vrot.slane %v3214_v45, 2 }
  0xa9   : > { %2835 = vmatmul.msk.bf16.vlgmr.msrb.gmra.mxu2 %vm479_vm1, %v799_v44  ;;  %v3456_v44 = vsel %vm1462_vm4, %v1464_v60, %v1466_v48  ;;  %v804_v60 = vrot.slane %v3232_v53, 1 }
  0xaa   : > { %2873 = vmatmul.msk.bf16.vlgmr.msrb.gmra.mxu0 %vm479_vm1, %v1189_v32  ;;  %4368 = vst [vmem:[#allocation24_spill] sm:$0xff] %v3456_v44  ;;  %v1192_v41 = vor.u32 %v1191_v33, %v1190_v29 }
  0xac   : > { %v597_v63 = vpop.f32.mrf.mxu2  ;;  %v1193_v32 = vsel %vm1182_vm5, %v1188_v20, %v1192_v41  ;;  %v1194_v20 = vrot.slane %v3271_v4, 1 }
  0xad   : > { %v3450_v7 = vadd.f32 %v735_v18, %v597_v63 }
  0xae   : > { %v737_v62 = vpop.f32.mrf.mxu3 }
  0xaf   : > { %4367 = vst [vmem:[#allocation23_spill] sm:$0xff] %v3450_v7  ;;  %v554_v19 = vpop.f32.mrf.mxu0 }
  0xb0   : > { %v695_v37 = vpop.f32.mrf.mxu1  ;;  %v3458_v34 = vadd.f32 %v692_v36, %v554_v19  ;;  %v1468_v36 = vrot.slane %v3232_v53, 2 }
  0xb3   : > { %2855 = vmatmul.msk.bf16.gmra.mxu3 %vm479_vm1, %v803_v35  ;;  %2893 = vmatmul.msk.bf16.gmra.mxu1 %vm479_vm1, %v3456_v44 }
  0xb4   : > { %v599_v38 = vpop.f32.mrf.mxu2 }
  0xb5   : > { %v3463_v61 = vadd.f32 %v737_v62, %v599_v38  ;;  %v805_v38 = vsel %vm796_vm3, %v802_v12, %v804_v60 }
  0xb6   : > { %v740_v58 = vpop.f32.mrf.mxu3 }
  0xb7   : > { %4369 = vst [vmem:[#allocation25_spill] sm:$0xff] %v3463_v61  ;;  %v557_v18 = vpop.f32.mrf.mxu0 }
  0xb8   : > { %v697_v63 = vpop.f32.mrf.mxu1  ;;  %v3466_v7 = vadd.f32 %v695_v37, %v557_v18  ;;  %v1195_v37 = vrot.slane %v3244_v57, 2 }
  0xb9   : > { %2836 = vmatmul.msk.bf16.gmra.mxu2 %vm479_vm1, %v801_v59  ;;  %v3478_v59 = vsel %vm1462_vm4, %v1466_v48, %v1468_v36  ;;  %v806_v48 = vrot.slane %v3262_v1, 1 }
  0xba   : > { %2874 = vmatmul.msk.bf16.gmra.mxu0 %vm479_vm1, %v1193_v32  ;;  %4371 = vst [vmem:[#allocation27_spill] sm:$0xff] %v3478_v59  ;;  %v1196_v53 = vor.u32 %v1195_v37, %v1194_v20 }
  0xbc   : > { %v602_v19 = vpop.f32.mrf.mxu2 }
  0xbd   : > { %v3472_v29 = vadd.f32 %v740_v58, %v602_v19 }
  0xbe   : > { %v742_v62 = vpop.f32.mrf.mxu3 }
  0xbf   : > { %4370 = vst [vmem:[#allocation26_spill] sm:$0xff] %v3472_v29  ;;  %v559_v33 = vpop.f32.mrf.mxu0  ;;  %v1197_v29 = vsel %vm1182_vm5, %v1192_v41, %v1196_v53  ;;  %v1198_v41 = vrot.slane %v3301_v25, 1 }
  0xc0   : > { %v700_v61 = vpop.f32.mrf.mxu1  ;;  %v3480_v18 = vadd.f32 %v697_v63, %v559_v33  ;;  %v1470_v63 = vrot.slane %v3262_v1, 2 }
  0xc3   : > { %2856 = vmatmul.msk.bf16.gmra.mxu3 %vm479_vm1, %v805_v38  ;;  %2894 = vmatmul.msk.bf16.gmra.mxu1 %vm479_vm1, %v3478_v59 }
  0xc4   : > { %v604_v58 = vpop.f32.mrf.mxu2 }
  0xc5   : > { %v3485_v32 = vadd.f32 %v742_v62, %v604_v58  ;;  %v807_v58 = vsel %vm796_vm3, %v804_v60, %v806_v48 }
  0xc6   : > { %v745_v12 = vpop.f32.mrf.mxu3 }
  0xc7   : > { %4372 = vst [vmem:[#allocation28_spill] sm:$0xff] %v3485_v32  ;;  %v562_v19 = vpop.f32.mrf.mxu0 }
  0xc8   : > { %v702_v44 = vpop.f32.mrf.mxu1  ;;  %v3488_v57 = vadd.f32 %v700_v61, %v562_v19  ;;  %v1199_v61 = vrot.slane %v3274_v5, 2 }
  0xc9   : > { %2837 = vmatmul.msk.bf16.gmra.mxu2 %vm479_vm1, %v803_v35  ;;  %v3500_v35 = vsel %vm1462_vm4, %v1468_v36, %v1470_v63  ;;  %v1472_v36 = vrot.slane %v3292_v22, 2 }
  0xca   : > { %2875 = vmatmul.msk.bf16.gmra.mxu0 %vm479_vm1, %v1197_v29  ;;  %4374 = vst [vmem:[#allocation30_spill] sm:$0xff] %v3500_v35  ;;  %v1200_v1 = vor.u32 %v1199_v61, %v1198_v41 }
  0xcc   : > { %v607_v33 = vpop.f32.mrf.mxu2 }
  0xcd   : > { %v3494_v20 = vadd.f32 %v745_v12, %v607_v33 }
  0xce   : > { %v747_v62 = vpop.f32.mrf.mxu3 }
  0xcf   : > { %4373 = vst [vmem:[#allocation29_spill] sm:$0xff] %v3494_v20  ;;  %v564_v37 = vpop.f32.mrf.mxu0  ;;  %v1201_v20 = vsel %vm1182_vm5, %v1196_v53, %v1200_v1  ;;  %v1202_v53 = vrot.slane %v3331_v49, 1 }
  0xd0   : > { %v705_v32 = vpop.f32.mrf.mxu1  ;;  %v3502_v29 = vadd.f32 %v702_v44, %v564_v37  ;;  %v808_v44 = vrot.slane %v3292_v22, 1 }
  0xd3   : > { %2857 = vmatmul.msk.bf16.gmra.mxu3 %vm479_vm1, %v807_v58  ;;  %2895 = vmatmul.msk.bf16.gmra.mxu1 %vm479_vm1, %v3500_v35 }
  0xd4   : > { %v609_v12 = vpop.f32.mrf.mxu2 }
  0xd5   : > { %v3507_v19 = vadd.f32 %v747_v62, %v609_v12  ;;  %v809_v12 = vsel %vm796_vm3, %v806_v48, %v808_v44 }
  0xd6   : > { %v750_v60 = vpop.f32.mrf.mxu3 }
  0xd7   : > { %4375 = vst [vmem:[#allocation31_spill] sm:$0xff] %v3507_v19  ;;  %v567_v33 = vpop.f32.mrf.mxu0 }
  0xd8   : > { %v707_v59 = vpop.f32.mrf.mxu1  ;;  %v3510_v5 = vadd.f32 %v705_v32, %v567_v33  ;;  %v1203_v32 = vrot.slane %v3304_v26, 2 }
  0xd9   : > { %2838 = vmatmul.msk.bf16.gmra.mxu2 %vm479_vm1, %v805_v38  ;;  %v3522_v38 = vsel %vm1462_vm4, %v1470_v63, %v1472_v36  ;;  %v1474_v63 = vrot.slane %v3322_v46, 2 }
  0xda   : > { %2876 = vmatmul.msk.bf16.gmra.mxu0 %vm479_vm1, %v1201_v20  ;;  %4377 = vst [vmem:[#allocation33_spill] sm:$0xff] %v3522_v38  ;;  %v1204_v22 = vor.u32 %v1203_v32, %v1202_v53 }
  0xdc   : > { %v612_v37 = vpop.f32.mrf.mxu2 }
  0xdd   : > { %v3516_v41 = vadd.f32 %v750_v60, %v612_v37 }
  0xde   : > { %v752_v62 = vpop.f32.mrf.mxu3 }
  0xdf   : > { %4376 = vst [vmem:[#allocation32_spill] sm:$0xff] %v3516_v41  ;;  %v569_v61 = vpop.f32.mrf.mxu0  ;;  %v1205_v41 = vsel %vm1182_vm5, %v1200_v1, %v1204_v22  ;;  %v1206_v1 = vrot.slane %v3361_v9, 1 }
  0xe0   : > { %v710_v19 = vpop.f32.mrf.mxu1  ;;  %v3524_v20 = vadd.f32 %v707_v59, %v569_v61  ;;  %v810_v59 = vrot.slane %v3322_v46, 1 }
  0xe3   : > { %2858 = vmatmul.msk.bf16.gmra.mxu3 %vm479_vm1, %v809_v12  ;;  %2896 = vmatmul.msk.bf16.gmra.mxu1 %vm479_vm1, %v3522_v38 }
  0xe4   : > { %v614_v60 = vpop.f32.mrf.mxu2 }
  0xe5   : > { %v3529_v33 = vadd.f32 %v752_v62, %v614_v60  ;;  %v811_v60 = vsel %vm796_vm3, %v808_v44, %v810_v59 }
  0xe6   : > { %v755_v48 = vpop.f32.mrf.mxu3 }
  0xe7   : > { %4378 = vst [vmem:[#allocation34_spill] sm:$0xff] %v3529_v33  ;;  %v572_v37 = vpop.f32.mrf.mxu0 }
  0xe8   : > { %v712_v35 = vpop.f32.mrf.mxu1  ;;  %v3532_v26 = vadd.f32 %v710_v19, %v572_v37  ;;  %v1207_v19 = vrot.slane %v3334_v50, 2 }
  0xe9   : > { %2839 = vmatmul.msk.bf16.gmra.mxu2 %vm479_vm1, %v807_v58  ;;  %v3544_v58 = vsel %vm1462_vm4, %v1472_v36, %v1474_v63  ;;  %v1476_v36 = vrot.slane %v3352_v6, 2 }
  0xea   : > { %2877 = vmatmul.msk.bf16.gmra.mxu0 %vm479_vm1, %v1205_v41  ;;  %4380 = vst [vmem:[#allocation36_spill] sm:$0xff] %v3544_v58  ;;  %v1208_v46 = vor.u32 %v1207_v19, %v1206_v1 }
  0xec   : > { %v617_v61 = vpop.f32.mrf.mxu2 }
  0xed   : > { %v3538_v53 = vadd.f32 %v755_v48, %v617_v61 }
  0xee   : > { %v757_v62 = vpop.f32.mrf.mxu3 }
  0xef   : > { %4379 = vst [vmem:[#allocation35_spill] sm:$0xff] %v3538_v53  ;;  %v574_v32 = vpop.f32.mrf.mxu0  ;;  %v1209_v53 = vsel %vm1182_vm5, %v1204_v22, %v1208_v46  ;;  %v1210_v22 = vrot.slane %v3397_v51, 1 }
  0xf0   : > { %v715_v33 = vpop.f32.mrf.mxu1  ;;  %v3546_v41 = vadd.f32 %v712_v35, %v574_v32  ;;  %v812_v35 = vrot.slane %v3352_v6, 1 }
  0xf3   : > { %2859 = vmatmul.msk.bf16.gmra.mxu3 %vm479_vm1, %v811_v60  ;;  %2897 = vmatmul.msk.bf16.gmra.mxu1 %vm479_vm1, %v3544_v58 }
  0xf4   : > { %v619_v48 = vpop.f32.mrf.mxu2 }
  0xf5   : > { %v3551_v37 = vadd.f32 %v757_v62, %v619_v48  ;;  %v813_v48 = vsel %vm796_vm3, %v810_v59, %v812_v35 }
  0xf6   : > { %v760_v44 = vpop.f32.mrf.mxu3 }
  0xf7   : > { %4381 = vst [vmem:[#allocation37_spill] sm:$0xff] %v3551_v37  ;;  %v577_v61 = vpop.f32.mrf.mxu0 }
  0xf8   : > { %v717_v38 = vpop.f32.mrf.mxu1  ;;  %v3554_v50 = vadd.f32 %v715_v33, %v577_v61  ;;  %v1211_v33 = vrot.slane %v3364_v17, 2 }
  0xf9   : > { %2840 = vmatmul.msk.bf16.gmra.mxu2 %vm479_vm1, %v809_v12  ;;  %v3566_v12 = vsel %vm1462_vm4, %v1474_v63, %v1476_v36  ;;  %v1478_v63 = vrot.slane %v3131_v10, 2 }
  0xfa   : > { %2878 = vmatmul.msk.bf16.gmra.mxu0 %vm479_vm1, %v1209_v53  ;;  %4383 = vst [vmem:[#allocation39_spill] sm:$0xff] %v3566_v12  ;;  %v1212_v6 = vor.u32 %v1211_v33, %v1210_v22 }
  0xfc   : > { %v622_v32 = vpop.f32.mrf.mxu2 }
  0xfd   : > { %v3560_v1 = vadd.f32 %v760_v44, %v622_v32 }
  0xfe   : > { %v762_v62 = vpop.f32.mrf.mxu3 }
  0xff   : > { %4382 = vst [vmem:[#allocation38_spill] sm:$0xff] %v3560_v1  ;;  %v579_v19 = vpop.f32.mrf.mxu0  ;;  %v1213_v1 = vsel %vm1182_vm5, %v1208_v46, %v1212_v6  ;;  %v1214_v46 = vrot.slane %v3148_v15, 1 }
 0x100   : > { %v720_v37 = vpop.f32.mrf.mxu1  ;;  %v3568_v53 = vadd.f32 %v717_v38, %v579_v19  ;;  %v814_v38 = vrot.slane %v3131_v10, 1 }
 0x103   : > { %2860 = vmatmul.msk.bf16.gmra.mxu3 %vm479_vm1, %v813_v48  ;;  %2898 = vmatmul.msk.bf16.gmra.mxu1 %vm479_vm1, %v3566_v12 }
 0x104   : > { %v624_v44 = vpop.f32.mrf.mxu2 }
 0x105   : > { %v3573_v61 = vadd.f32 %v762_v62, %v624_v44  ;;  %v815_v44 = vsel %vm796_vm3, %v812_v35, %v814_v38 }
 0x106   : > { %v765_v59 = vpop.f32.mrf.mxu3 }
 0x107   : > { %4384 = vst [vmem:[#allocation40_spill] sm:$0xff] %v3573_v61  ;;  %v582_v32 = vpop.f32.mrf.mxu0 }
 0x108   : > { %v722_v58 = vpop.f32.mrf.mxu1  ;;  %v3576_v17 = vadd.f32 %v720_v37, %v582_v32  ;;  %v1215_v37 = vrot.slane %v3145_v14, 2 }
 0x109   : > { %2841 = vmatmul.msk.bf16.gmra.mxu2 %vm479_vm1, %v811_v60  ;;  %v3588_v60 = vsel %vm1462_vm4, %v1476_v36, %v1478_v63  ;;  %v1480_v36 = vrot.slane %v3134_v11, 2 }
 0x10a   : > { %2879 = vmatmul.msk.bf16.gmra.mxu0 %vm479_vm1, %v1213_v1  ;;  %4386 = vst [vmem:[#allocation42_spill] sm:$0xff] %v3588_v60  ;;  %v1216_v10 = vor.u32 %v1215_v37, %v1214_v46 }
 0x10c   : > { %v627_v19 = vpop.f32.mrf.mxu2 }
 0x10d   : > { %v3582_v22 = vadd.f32 %v765_v59, %v627_v19 }
 0x10e   : > { %v767_v62 = vpop.f32.mrf.mxu3 }
 0x10f   : > { %4385 = vst [vmem:[#allocation41_spill] sm:$0xff] %v3582_v22  ;;  %v584_v33 = vpop.f32.mrf.mxu0  ;;  %v1217_v22 = vsel %vm1182_vm5, %v1212_v6, %v1216_v10  ;;  %v1218_v6 = vrot.slane %v3176_v30, 1 }
 0x110   : > { %v725_v61 = vpop.f32.mrf.mxu1  ;;  %v3590_v1 = vadd.f32 %v722_v58, %v584_v33  ;;  %v816_v58 = vrot.slane %v3134_v11, 1 }
 0x113   : > { %2861 = vmatmul.msk.bf16.gmra.mxu3 %vm479_vm1, %v815_v44  ;;  %2899 = vmatmul.msk.bf16.gmra.mxu1 %vm479_vm1, %v3588_v60 }
 0x114   : > { %v629_v59 = vpop.f32.mrf.mxu2 }
 0x115   : > { %v3595_v32 = vadd.f32 %v767_v62, %v629_v59  ;;  %v817_v59 = vsel %vm796_vm3, %v814_v38, %v816_v58 }
 0x116   : > { %v770_v35 = vpop.f32.mrf.mxu3 }
 0x117   : > { %4387 = vst [vmem:[#allocation43_spill] sm:$0xff] %v3595_v32  ;;  %v587_v19 = vpop.f32.mrf.mxu0 }
 0x118   : > { %v727_v12 = vpop.f32.mrf.mxu1  ;;  %v3598_v14 = vadd.f32 %v725_v61, %v587_v19  ;;  %v1219_v61 = vrot.slane %v3151_v16, 2 }
 0x119   : > { %2842 = vmatmul.msk.bf16.gmra.mxu2 %vm479_vm1, %v813_v48  ;;  %v3610_v48 = vsel %vm1462_vm4, %v1478_v63, %v1480_v36 }
 0x11a   : > { %2880 = vmatmul.msk.bf16.gmra.mxu0 %vm479_vm1, %v1217_v22  ;;  %4389 = vst [vmem:[#allocation45_spill] sm:$0xff] %v3610_v48  ;;  %v3014_v22 = vld [vmem:[%s4297_s3 + $0x8] sm:$0xff]  ;;  %v1220_v38 = vor.u32 %v1219_v61, %v1218_v6 }
 0x11b   : > { %2533 = vmatpush.bf16.msra.mxu1 %v3014_v22 }
 0x11c   : > { %v632_v33 = vpop.f32.mrf.mxu2  ;;  %v1221_v63 = vsel %vm1182_vm5, %v1216_v10, %v1220_v38  ;;  %v1223_v10 = vrot.slane %v3179_v31, 2 }
 0x11d   : > { %v3604_v46 = vadd.f32 %v770_v35, %v632_v33 }
 0x11e   : > { %v772_v62 = vpop.f32.mrf.mxu3 }
 0x11f   : > { %4388 = vst [vmem:[#allocation44_spill] sm:$0xff] %v3604_v46  ;;  %v589_v37 = vpop.f32.mrf.mxu0 }
 0x120   : > { %v1566_v19 = vpop.f32.mrf.mxu1  ;;  %v3615_v11 = vadd.f32 %v727_v12, %v589_v37  ;;  %v818_v12 = vrot.slane %v3170_v28, 1  ;;  %v1482_v37 = vrot.slane %v3170_v28, 2 }
 0x123   : > { %2862 = vmatmul.msk.bf16.gmra.mxu3 %vm479_vm1, %v817_v59  ;;  %2900 = vmatmul.msk.bf16.gmra.mxu1 %vm479_vm1, %v3610_v48 }
 0x124   : > { %v634_v35 = vpop.f32.mrf.mxu2 }
 0x125   : > { %v3620_v33 = vadd.f32 %v772_v62, %v634_v35  ;;  %v819_v62 = vsel %vm796_vm3, %v816_v58, %v818_v12 }
 0x126   : > { %v1054_v46 = vpop.f32.mrf.mxu3 }
 0x127   : > { %4390 = vst [vmem:[#allocation46_spill] sm:$0xff] %v3620_v33  ;;  %v1334_v32 = vpop.f32.mrf.mxu0  ;;  %v1222_v33 = vrot.slane %v3205_v42, 1 }
 0x128   : > { %v1568_v60 = vpop.f32.mrf.mxu1 }
 0x129   : > { %2843 = vmatmul.msk.bf16.gmra.mxu2 %vm479_vm1, %v815_v44  ;;  %v3632_v44 = vsel %vm1462_vm4, %v1480_v36, %v1482_v37  ;;  %v820_v36 = vrot.slane %v3199_v40, 1 }
 0x12a   : > { %2881 = vmatmul.msk.bf16.gmra.mxu0 %vm479_vm1, %v1221_v63 }
 0x12c   : > { %v900_v22 = vpop.f32.mrf.mxu2 }
 0x12d   : > { %v990_v48 = vadd.f32 %v900_v22, %v3417_v8  ;;  %v1224_v8 = vor.u32 %v1223_v10, %v1222_v33 }
 0x12e   : > { %v1056_v6 = vpop.f32.mrf.mxu3 }
 0x12f   : > { %v1144_v61 = vadd.f32 %v1054_v46, %v990_v48  ;;  %v1336_v35 = vpop.f32.mrf.mxu0  ;;  %v1225_v31 = vsel %vm1182_vm5, %v1220_v38, %v1224_v8 }
 0x130   : > { %v1571_v16 = vpop.f32.mrf.mxu1 }
 0x131   : > { %v1424_v63 = vadd.f32 %v1334_v32, %v1144_v61 }
 0x133   : > { %2863 = vmatmul.msk.bf16.gmra.mxu3 %vm479_vm1, %v819_v62  ;;  %2901 = vmatmul.msk.bf16.gmra.mxu1 %vm479_vm1, %v3632_v44  ;;  %v3637_v28 = vadd.f32 %v1566_v19, %v1424_v63  ;;  %v1484_v19 = vrot.slane %v3199_v40, 2 }
 0x134   : > { %v902_v58 = vpop.f32.mrf.mxu2 }
 0x135   : > { %v991_v46 = vadd.f32 %v902_v58, %v3435_v39  ;;  %v1226_v58 = vrot.slane %v3235_v54, 1 }
 0x136   : > { %v1059_v48 = vpop.f32.mrf.mxu3 }
 0x137   : > { %v1145_v22 = vadd.f32 %v1056_v6, %v991_v46  ;;  %v1339_v42 = vpop.f32.mrf.mxu0  ;;  %v821_v6 = vsel %vm796_vm3, %v818_v12, %v820_v36 }
 0x138   : > { %v1573_v30 = vpop.f32.mrf.mxu1 }
 0x139   : > { %2844 = vmatmul.msk.bf16.gmra.mxu2 %vm479_vm1, %v817_v59  ;;  %v1425_v32 = vadd.f32 %v1336_v35, %v1145_v22  ;;  %v1227_v59 = vrot.slane %v3208_v43, 2 }
 0x13a   : > { %2882 = vmatmul.msk.bf16.gmra.mxu0 %vm479_vm1, %v1225_v31  ;;  %v3652_v31 = vsel %vm1462_vm4, %v1482_v37, %v1484_v19  ;;  %v822_v37 = vrot.slane %v3229_v52, 1 }
 0x13b   : > { %v3644_v61 = vadd.f32 %v1568_v60, %v1425_v32 }
 0x13c   : > { %v905_v33 = vpop.f32.mrf.mxu2 }
 0x13d   : > { %v992_v39 = vadd.f32 %v905_v33, %v3444_v27  ;;  %v1228_v27 = vor.u32 %v1227_v59, %v1226_v58 }
 0x13e   : > { %v1061_v10 = vpop.f32.mrf.mxu3 }
 0x13f   : > { %v1146_v63 = vadd.f32 %v1059_v48, %v992_v39  ;;  %v1341_v38 = vpop.f32.mrf.mxu0  ;;  %v1229_v33 = vsel %vm1182_vm5, %v1224_v8, %v1228_v27 }
 0x140   : > { %v1576_v35 = vpop.f32.mrf.mxu1 }
 0x141   : > { %v1426_v60 = vadd.f32 %v1339_v42, %v1146_v63 }
 0x143   : > { %2864 = vmatmul.msk.bf16.gmra.mxu3 %vm479_vm1, %v821_v6  ;;  %2902 = vmatmul.msk.bf16.gmra.mxu1 %vm479_vm1, %v3652_v31  ;;  %v3657_v40 = vadd.f32 %v1571_v16, %v1426_v60  ;;  %v1486_v16 = vrot.slane %v3229_v52, 2 }
 0x144   : > { %v907_v12 = vpop.f32.mrf.mxu2 }
 0x145   : > { %v993_v46 = vadd.f32 %v907_v12, %v3458_v34  ;;  %v1230_v12 = vrot.slane %v3265_v2, 1 }
 0x146   : > { %v1064_v48 = vpop.f32.mrf.mxu3 }
 0x147   : > { %v1147_v22 = vadd.f32 %v1061_v10, %v993_v46  ;;  %v1344_v32 = vpop.f32.mrf.mxu0  ;;  %v823_v10 = vsel %vm796_vm3, %v820_v36, %v822_v37  ;;  %v3672_v46 = vsel %vm1462_vm4, %v1484_v19, %v1486_v16 }
 0x148   : > { %v1578_v39 = vpop.f32.mrf.mxu1 }
 0x149   : > { %2845 = vmatmul.msk.bf16.gmra.mxu2 %vm479_vm1, %v819_v62  ;;  %v1427_v42 = vadd.f32 %v1341_v38, %v1147_v22  ;;  %v1231_v62 = vrot.slane %v3238_v55, 2 }
 0x14a   : > { %2883 = vmatmul.msk.bf16.gmra.mxu0 %vm479_vm1, %v1229_v33 }
 0x14b   : > { %v3664_v63 = vadd.f32 %v1573_v30, %v1427_v42 }
 0x14c   : > { %v910_v58 = vpop.f32.mrf.mxu2 }
 0x14d   : > { %v994_v34 = vadd.f32 %v910_v58, %v3466_v7  ;;  %v1232_v7 = vor.u32 %v1231_v62, %v1230_v12 }
 0x14e   : > { %v1066_v59 = vpop.f32.mrf.mxu3 }
 0x14f   : > { %v1148_v60 = vadd.f32 %v1064_v48, %v994_v34  ;;  %v1346_v8 = vpop.f32.mrf.mxu0  ;;  %v1233_v58 = vsel %vm1182_vm5, %v1228_v27, %v1232_v7 }
 0x150   : > { %v1581_v38 = vpop.f32.mrf.mxu1 }
 0x151   : > { %v1428_v30 = vadd.f32 %v1344_v32, %v1148_v60  ;;  %v824_v32 = vrot.slane %v3259_v0, 1 }
 0x153   : > { %2865 = vmatmul.msk.bf16.gmra.mxu3 %vm479_vm1, %v823_v10  ;;  %2903 = vmatmul.msk.bf16.gmra.mxu1 %vm479_vm1, %v3672_v46  ;;  %v3677_v52 = vadd.f32 %v1576_v35, %v1428_v30  ;;  %v1488_v35 = vrot.slane %v3259_v0, 2 }
 0x154   : > { %v912_v36 = vpop.f32.mrf.mxu2 }
 0x155   : > { %v995_v48 = vadd.f32 %v912_v36, %v3480_v18  ;;  %v1234_v36 = vrot.slane %v3295_v23, 1 }
 0x156   : > { %v1069_v22 = vpop.f32.mrf.mxu3 }
 0x157   : > { %v1149_v33 = vadd.f32 %v1066_v59, %v995_v48  ;;  %v1349_v42 = vpop.f32.mrf.mxu0  ;;  %v825_v59 = vsel %vm796_vm3, %v822_v37, %v824_v32  ;;  %v3692_v48 = vsel %vm1462_vm4, %v1486_v16, %v1488_v35 }
 0x158   : > { %v1583_v34 = vpop.f32.mrf.mxu1 }
 0x159   : > { %2846 = vmatmul.msk.bf16.gmra.mxu2 %vm479_vm1, %v821_v6  ;;  %v1429_v19 = vadd.f32 %v1346_v8, %v1149_v33  ;;  %v1235_v6 = vrot.slane %v3268_v3, 2 }
 0x15a   : > { %2884 = vmatmul.msk.bf16.gmra.mxu0 %vm479_vm1, %v1233_v58 }
 0x15b   : > { %v3684_v60 = vadd.f32 %v1578_v39, %v1429_v19  ;;  %v1236_v0 = vor.u32 %v1235_v6, %v1234_v36 }
 0x15c   : > { %v915_v12 = vpop.f32.mrf.mxu2 }
 0x15d   : > { %v996_v18 = vadd.f32 %v915_v12, %v3488_v57  ;;  %v1237_v12 = vsel %vm1182_vm5, %v1232_v7, %v1236_v0 }
 0x15e   : > { %v1071_v62 = vpop.f32.mrf.mxu3 }
 0x15f   : > { %v1150_v30 = vadd.f32 %v1069_v22, %v996_v18  ;;  %v1351_v27 = vpop.f32.mrf.mxu0 }
 0x160   : > { %v1586_v8 = vpop.f32.mrf.mxu1 }
 0x161   : > { %v1430_v39 = vadd.f32 %v1349_v42, %v1150_v30  ;;  %v826_v42 = vrot.slane %v3289_v21, 1 }
 0x163   : > { %2866 = vmatmul.msk.bf16.gmra.mxu3 %vm479_vm1, %v825_v59  ;;  %2904 = vmatmul.msk.bf16.gmra.mxu1 %vm479_vm1, %v3692_v48  ;;  %v3697_v57 = vadd.f32 %v1581_v38, %v1430_v39  ;;  %v1490_v38 = vrot.slane %v3289_v21, 2 }
 0x164   : > { %v917_v37 = vpop.f32.mrf.mxu2 }
 0x165   : > { %v997_v22 = vadd.f32 %v917_v37, %v3502_v29  ;;  %v1238_v37 = vrot.slane %v3325_v47, 1 }
 0x166   : > { %v1074_v33 = vpop.f32.mrf.mxu3 }
 0x167   : > { %v1151_v58 = vadd.f32 %v1071_v62, %v997_v22  ;;  %v1354_v19 = vpop.f32.mrf.mxu0  ;;  %v827_v62 = vsel %vm796_vm3, %v824_v32, %v826_v42  ;;  %v3712_v22 = vsel %vm1462_vm4, %v1488_v35, %v1490_v38 }
 0x168   : > { %v1588_v18 = vpop.f32.mrf.mxu1  ;;  %4391 = vst [vmem:[#allocation47_spill] sm:$0xff] %v3712_v22 }
 0x169   : > { %2847 = vmatmul.msk.bf16.gmra.mxu2 %vm479_vm1, %v823_v10  ;;  %v1431_v16 = vadd.f32 %v1351_v27, %v1151_v58  ;;  %v1239_v10 = vrot.slane %v3298_v24, 2 }
 0x16a   : > { %2885 = vmatmul.msk.bf16.gmra.mxu0 %vm479_vm1, %v1237_v12 }
 0x16b   : > { %v3704_v30 = vadd.f32 %v1583_v34, %v1431_v16  ;;  %v1240_v21 = vor.u32 %v1239_v10, %v1238_v37 }
 0x16c   : > { %v920_v36 = vpop.f32.mrf.mxu2 }
 0x16d   : > { %v998_v29 = vadd.f32 %v920_v36, %v3510_v5  ;;  %v1241_v36 = vsel %vm1182_vm5, %v1236_v0, %v1240_v21 }
 0x16e   : > { %v1076_v6 = vpop.f32.mrf.mxu3 }
 0x16f   : > { %v1152_v39 = vadd.f32 %v1074_v33, %v998_v29  ;;  %v1356_v7 = vpop.f32.mrf.mxu0 }
 0x170   : > { %v1591_v27 = vpop.f32.mrf.mxu1 }
 0x171   : > { %v1432_v34 = vadd.f32 %v1354_v19, %v1152_v39  ;;  %v4393_v19 = vld [vmem:[#allocation12_spill] sm:$0xff] }
 0x172   : > { %v828_v39 = vrot.slane %v4393_v19, 1 }
 0x173   : > { %2867 = vmatmul.msk.bf16.gmra.mxu3 %vm479_vm1, %v827_v62  ;;  %2905 = vmatmul.msk.bf16.gmra.mxu1 %vm479_vm1, %v3712_v22  ;;  %v3717_v5 = vadd.f32 %v1586_v8, %v1432_v34  ;;  %v1492_v8 = vrot.slane %v4393_v19, 2 }
 0x174   : > { %v922_v32 = vpop.f32.mrf.mxu2 }
 0x175   : > { %4392 = vst [vmem:[#allocation48_spill] sm:$0xff] %v3717_v5  ;;  %v999_v33 = vadd.f32 %v922_v32, %v3524_v20  ;;  %v4395_v32 = vld [vmem:[#allocation16_spill] sm:$0xff] }
 0x176   : > { %v1079_v58 = vpop.f32.mrf.mxu3 }
 0x177   : > { %v1153_v12 = vadd.f32 %v1076_v6, %v999_v33  ;;  %v1359_v16 = vpop.f32.mrf.mxu0  ;;  %v829_v6 = vsel %vm796_vm3, %v826_v42, %v828_v39  ;;  %v1242_v33 = vrot.slane %v4395_v32, 1 }
 0x178   : > { %v1593_v29 = vpop.f32.mrf.mxu1 }
 0x179   : > { %2848 = vmatmul.msk.bf16.gmra.mxu2 %vm479_vm1, %v825_v59  ;;  %v1433_v35 = vadd.f32 %v1356_v7, %v1153_v12  ;;  %v4396_v59 = vld [vmem:[#allocation13_spill] sm:$0xff] }
 0x17a   : > { %2886 = vmatmul.msk.bf16.gmra.mxu0 %vm479_vm1, %v1241_v36  ;;  %v1243_v7 = vrot.slane %v4396_v59, 2  ;;  %v3732_v36 = vsel %vm1462_vm4, %v1490_v38, %v1492_v8 }
 0x17b   : > { %v3724_v22 = vadd.f32 %v1588_v18, %v1433_v35 }
 0x17c   : > { %v925_v37 = vpop.f32.mrf.mxu2  ;;  %v1244_v35 = vor.u32 %v1243_v7, %v1242_v33 }
 0x17d   : > { %4394 = vst [vmem:[#allocation12_spill] sm:$0xff] %v3724_v22  ;;  %v1000_v20 = vadd.f32 %v925_v37, %v3532_v26 }
 0x17e   : > { %v1081_v10 = vpop.f32.mrf.mxu3  ;;  %v1245_v22 = vsel %vm1182_vm5, %v1240_v21, %v1244_v35 }
 0x17f   : > { %v1154_v34 = vadd.f32 %v1079_v58, %v1000_v20  ;;  %v1361_v0 = vpop.f32.mrf.mxu0 }
 0x180   : > { %v1596_v12 = vpop.f32.mrf.mxu1 }
 0x181   : > { %v1434_v18 = vadd.f32 %v1359_v16, %v1154_v34  ;;  %v4399_v16 = vld [vmem:[#allocation15_spill] sm:$0xff] }
 0x182   : > { %v3746_v34 = vrot.slane %v4399_v16, 1  ;;  %v1494_v33 = vrot.slane %v4399_v16, 2 }
 0x183   : > { %2868 = vmatmul.msk.bf16.gmra.mxu3 %vm479_vm1, %v829_v6  ;;  %2906 = vmatmul.msk.bf16.gmra.mxu1 %vm479_vm1, %v3732_v36  ;;  %v3737_v26 = vadd.f32 %v1591_v27, %v1434_v18 }
 0x184   : > { %v927_v42 = vpop.f32.mrf.mxu2  ;;  %v831_v21 = vsel %vm796_vm3, %v828_v39, %v3746_v34 }
 0x185   : > { %4397 = vst [vmem:[#allocation16_spill] sm:$0xff] %v3737_v26  ;;  %v1001_v58 = vadd.f32 %v927_v42, %v3546_v41 }
 0x186   : > { %v1084_v19 = vpop.f32.mrf.mxu3 }
 0x187   : > { %v1155_v37 = vadd.f32 %v1081_v10, %v1001_v58  ;;  %v1364_v20 = vpop.f32.mrf.mxu0  ;;  %v4402_v58 = vld [vmem:[#allocation17_spill] sm:$0xff] }
 0x188   : > { %v3741_v5 = vpop.f32.mrf.mxu1 }
 0x189   : > { %4398 = vst [vmem:[#allocation13_spill] sm:$0xff] %v3741_v5  ;;  %2849 = vmatmul.msk.bf16.gmra.mxu2 %vm479_vm1, %v827_v62  ;;  %v1435_v38 = vadd.f32 %v1361_v0, %v1155_v37  ;;  %v4401_v62 = vld [vmem:[#allocation21_spill] sm:$0xff]  ;;  %v3757_v5 = vsel %vm1462_vm4, %v1492_v8, %v1494_v33 }
 0x18a   : > { %2887 = vmatmul.msk.bf16.gmra.mxu0 %vm479_vm1, %v1245_v22  ;;  %v1246_v0 = vrot.slane %v4401_v62, 1  ;;  %v1247_v22 = vrot.slane %v4402_v58, 2  ;;  %4403 = vst [vmem:[#allocation21_spill] sm:$0xff] %v3757_v5 }
 0x18b   : > { %v3748_v27 = vadd.f32 %v1593_v29, %v1435_v38 }
 0x18c   : > { %v930_v41 = vpop.f32.mrf.mxu2  ;;  %v1248_v38 = vor.u32 %v1247_v22, %v1246_v0 }
 0x18d   : > { %4400 = vst [vmem:[#allocation15_spill] sm:$0xff] %v3748_v27  ;;  %v1002_v10 = vadd.f32 %v930_v41, %v3554_v50 }
 0x18e   : > { %v1086_v7 = vpop.f32.mrf.mxu3  ;;  %v1249_v27 = vsel %vm1182_vm5, %v1244_v35, %v1248_v38 }
 0x18f   : > { %v1156_v18 = vadd.f32 %v1084_v19, %v1002_v10  ;;  %v1366_v42 = vpop.f32.mrf.mxu0 }
 0x190   : > { %v1601_v37 = vpop.f32.mrf.mxu1 }
 0x191   : > { %v1436_v29 = vadd.f32 %v1364_v20, %v1156_v18 }
 0x193   : > { %2869 = vmatmul.msk.bf16.gmra.mxu3 %vm479_vm1, %v831_v21  ;;  %2907 = vmatmul.msk.bf16.gmra.mxu1 %vm479_vm1, %v3757_v5  ;;  %v3762_v50 = vadd.f32 %v1596_v12, %v1436_v29  ;;  %v4407_v12 = vld [vmem:[#allocation19_spill] sm:$0xff] }
 0x194   : > { %v932_v39 = vpop.f32.mrf.mxu2  ;;  %v1032_v20 = vrot.slane %v4407_v12, 1  ;;  %v4339_v18 = vshrl.u32 %v4407_v12, 16 }
 0x195   : > { %4404 = vst [vmem:[#allocation17_spill] sm:$0xff] %v3762_v50  ;;  %v1003_v19 = vadd.f32 %v932_v39, %v3568_v53  ;;  %v4340_v53 = vshll.u32 %v4407_v12, 16 }
 0x196   : > { %v1089_v16 = vpop.f32.mrf.mxu3 }
 0x197   : > { %v1157_v41 = vadd.f32 %v1086_v7, %v1003_v19  ;;  %v1369_v10 = vpop.f32.mrf.mxu0  ;;  %v3776_v7 = vrot.slane %v4407_v12, 2  ;;  %v1256_v39 = vrot.slane %v4340_v53, 2 }
 0x198   : > { %v3766_v26 = vpop.f32.mrf.mxu1 }
 0x199   : > { %4405 = vst [vmem:[#allocation49_spill] sm:$0xff] %v3766_v26  ;;  %2850 = vmatmul.msk.bf16.gmra.mxu2 %vm479_vm1, %v829_v6  ;;  %v3769_v8 = vadd.f32 %v1366_v42, %v1157_v41  ;;  %v1033_v6 = vsel %vm796_vm3, %v3746_v34, %v1032_v20  ;;  %v3787_v41 = vsel %vm1462_vm4, %v1494_v33, %v3776_v7  ;;  %v3790_v26 = vld [vmem:[%s3128_s8 + $0x98] sm:$0xff]  }
 0x19a   : > { %2888 = vmatmul.msk.bf16.gmra.mxu0 %vm479_vm1, %v1249_v27  ;;  %v1253_v27 = vrot.slane %v4339_v18, 1 }
 0x19b   : > { %4406 = vst [vmem:[#allocation50_spill] sm:$0xff] %v3769_v8 }
 0x19c   : > { %v935_v0 = vpop.f32.mrf.mxu2 }
 0x19d   : > { %v1004_v35 = vadd.f32 %v935_v0, %v3576_v17  ;;  %v1257_v0 = vor.u32 %v1256_v39, %v1253_v27 }
 0x19e   : > { %v1091_v22 = vpop.f32.mrf.mxu3 }
 0x19f   : > { %v1158_v42 = vadd.f32 %v1089_v16, %v1004_v35  ;;  %v1371_v29 = vpop.f32.mrf.mxu0  ;;  %v3021_v35 = vunpack.c.l.bf16 %v3790_v26  ;;  %v1258_v5 = vsel %vm1182_vm5, %v1248_v38, %v1257_v0 }
 0x1a0   : > { %v1606_v19 = vpop.f32.mrf.mxu1 }
 0x1a1   : > { %v1438_v17 = vadd.f32 %v1369_v10, %v1158_v42  ;;  %v1027_v12 = vpack.c.bf16 %v3021_v35, %v3021_v35 }
 0x1a3   : > { %2870 = vmatmul.msk.bf16.gmra.mxu3 %vm479_vm1, %v1033_v6  ;;  %2908 = vmatmul.msk.bf16.gmra.mxu1 %vm479_vm1, %v3787_v41  ;;  %v3795_v16 = vadd.f32 %v1601_v37, %v1438_v17  ;;  %v1260_v37 = vshrl.u32 %v1027_v12, 16  ;;  %v1263_v42 = vshll.u32 %v1027_v12, 16  ;;  %v1034_v27 = vrot.slane %v1027_v12, 1 }
 0x1a4   : > { %v937_v18 = vpop.f32.mrf.mxu2  ;;  %v1498_v39 = vrot.slane %v1027_v12, 2 }
 0x1a5   : > { %4408 = vst [vmem:[#allocation51_spill] sm:$0xff] %v3795_v16  ;;  %v1005_v53 = vadd.f32 %v937_v18, %v3590_v1 }
 0x1a6   : > { %v1094_v8 = vpop.f32.mrf.mxu3 }
 0x1a7   : > { %v1159_v50 = vadd.f32 %v1091_v22, %v1005_v53  ;;  %v1374_v33 = vpop.f32.mrf.mxu0  ;;  %v1262_v53 = vrot.slane %v1260_v37, 1  ;;  %v1265_v22 = vrot.slane %v1263_v42, 2 }
 0x1a8   : > { %v3800_v10 = vpop.f32.mrf.mxu1 }
 0x1a9   : > { %4409 = vst [vmem:[#allocation52_spill] sm:$0xff] %v3800_v10  ;;  %2851 = vmatmul.msk.bf16.gmra.mxu2 %vm479_vm1, %v831_v21  ;;  %v3803_v6 = vadd.f32 %v1371_v29, %v1159_v50  ;;  %v1035_v10 = vsel %vm796_vm3, %v1032_v20, %v1034_v27  ;;  %v1499_v21 = vsel %vm1462_vm4, %v3776_v7, %v1498_v39 }
 0x1aa   : > { %2889 = vmatmul.msk.bf16.gmra.mxu0 %vm479_vm1, %v1258_v5  ;;  %v3013_v5 = vld [vmem:[%s4297_s3] sm:$0xff]  ;;  %v1266_v29 = vor.u32 %v1265_v22, %v1262_v53  ;;  %v1852_v53 = vrot.slane %v3241_v56, 2 }
 0x1ab   : > { %2534 = vmatpush.bf16.msra.mxu1 %v3013_v5 }
 0x1ac   : > { %v940_v17 = vpop.f32.mrf.mxu2  ;;  %v1267_v39 = vsel %vm1182_vm5, %v1257_v0, %v1266_v29 }
 0x1ad   : > { %v1006_v1 = vadd.f32 %v940_v17, %v3598_v14  ;;  %v4410_v14 = vld [vmem:[#allocation20_spill] sm:$0xff] }
 0x1ae   : > { %v1096_v18 = vpop.f32.mrf.mxu3  ;;  %v832_v12 = vrot.slane %v4410_v14, 1 }
 0x1af   : > { %v1160_v38 = vadd.f32 %v1094_v8, %v1006_v1  ;;  %v1376_v35 = vpop.f32.mrf.mxu0 }
 0x1b0   : > { %v1611_v16 = vpop.f32.mrf.mxu1  ;;  %v833_v27 = vsel %vm796_vm3, %v3746_v34, %v832_v12 }
 0x1b1   : > { %v1440_v50 = vadd.f32 %v1374_v33, %v1160_v38  ;;  %v4411_v33 = vld [vmem:[#allocation8_spill] sm:$0xff]  ;;  %v4412_v38 = vld [vmem:[#allocation6_spill] sm:$0xff] }
 0x1b2   : > { %v1849_v17 = vrot.slane %v4411_v33, 2  ;;  %v1850_v5 = vrot.slane %v4412_v38, 3 }
 0x1b3   : > { %2871 = vmatmul.msk.bf16.gmra.mxu3 %vm479_vm1, %v1035_v10  ;;  %2909 = vmatmul.msk.bf16.gmra.mxu1 %vm479_vm1, %v1499_v21  ;;  %v3816_v8 = vadd.f32 %v1606_v19, %v1440_v50  ;;  %v1853_v19 = vrot.slane %v3214_v45, 3  ;;  %v4413_v21 = vld [vmem:[#allocation22_spill] sm:$0xff] }
 0x1b4   : > { %v942_v20 = vpop.f32.mrf.mxu2  ;;  %v1851_v34 = vor.u32 %v1850_v5, %v1849_v17 }
 0x1b5   : > { %v1007_v37 = vadd.f32 %v942_v20, %v3615_v11  ;;  %v1854_v0 = vor.u32 %v1853_v19, %v1852_v53  ;;  %v1856_v19 = vrot.slane %v3271_v4, 2 }
 0x1b6   : > { %v1099_v42 = vpop.f32.mrf.mxu3 }
 0x1b7   : > { %v1161_v1 = vadd.f32 %v1096_v18, %v1007_v37  ;;  %v1379_v10 = vpop.f32.mrf.mxu0  ;;  %v1855_v45 = vsel %vm1848_vm6, %v1851_v34, %v1854_v0  ;;  %v3039_v37 = vld [vmem:[%s3128_s8 + $0x10] sm:$0xff] }
 0x1b8   : > { %v3826_v22 = vpop.f32.mrf.mxu1 }
 0x1b9   : > { %2852 = vmatmul.msk.bf16.gmra.mxu2 %vm479_vm1, %v833_v27  ;;  %v3829_v11 = vadd.f32 %v1376_v35, %v1161_v1  ;;  %v2129_v27 = vrot.slane %v3039_v37, 3 }
 0x1ba   : > { %2890 = vmatmul.msk.bf16.gmra.mxu0 %vm479_vm1, %v1267_v39  ;;  %v3040_v39 = vld [vmem:[%s3128_s8 + $0x18] sm:$0xff] }
 0x1bb   : > { %v2130_v33 = vrot.slane %v3040_v39, 3 }
 0x1bc   : > { %v945_v18 = vpop.f32.mrf.mxu2 }
 0x1bd   : > { %v1008_v50 = vadd.f32 %v945_v18, %v4413_v21  ;;  %v2131_v53 = vsel %vm2128_vm7, %v2129_v27, %v2130_v33  ;;  %v4416_v18 = vld [vmem:[#allocation24_spill] sm:$0xff] }
 0x1be   : > { %v1101_v14 = vpop.f32.mrf.mxu3 }
 0x1bf   : > { %v1162_v56 = vadd.f32 %v1099_v42, %v1008_v50  ;;  %v1381_v12 = vpop.f32.mrf.mxu0 }
 0x1c0   : > { %v1616_v29 = vpop.f32.mrf.mxu1 }
 0x1c1   : > { %v1442_v20 = vadd.f32 %v1379_v10, %v1162_v56  ;;  %v4414_v10 = vld [vmem:[#allocation9_spill] sm:$0xff] }
 0x1c2   : > { %v1857_v34 = vrot.slane %v4414_v10, 3  ;;  %v4418_v10 = vld [vmem:[#allocation25_spill] sm:$0xff] }
 0x1c3   : > { %2930 = vmatmul.msk.bf16.vlgmr.msra.gmra.mxu3 %vm479_vm1, %v1855_v45  ;;  %v3835_v35 = vadd.f32 %v1611_v16, %v1442_v20 }
 0x1c4   : > { %v947_v17 = vpop.f32.mrf.mxu2 }
 0x1c5   : > { %v1009_v1 = vadd.f32 %v947_v17, %v3440_v13  ;;  %v1858_v13 = vor.u32 %v1857_v34, %v1856_v19 }
 0x1c6   : > { %v1104_v38 = vpop.f32.mrf.mxu3 }
 0x1c7   : > { %v1163_v5 = vadd.f32 %v1101_v14, %v1009_v1  ;;  %v1384_v42 = vpop.f32.mrf.mxu0  ;;  %v4417_v14 = vld [vmem:[#allocation23_spill] sm:$0xff]  ;;  %v1859_v4 = vsel %vm1848_vm6, %v1854_v0, %v1858_v13  ;;  %v3041_v1 = vld [vmem:[%s3128_s8 + $0x20] sm:$0xff] }
 0x1c8   : > { %v3843_v16 = vpop.f32.mrf.mxu1 }
 0x1c9   : > { %4415 = vst [vmem:[#allocation20_spill] sm:$0xff] %v3843_v16  ;;  %2911 = vmatmul.msk.bf16.vlgmr.msra.gmra.mxu2 %vm479_vm1, %v4416_v18  ;;  %v3847_v21 = vadd.f32 %v1381_v12, %v1163_v5  ;;  %v2132_v12 = vrot.slane %v3041_v1, 3 }
 0x1ca   : > { %2949 = vmatmul.msk.bf16.vlgmr.msra.gmra.mxu0 %vm479_vm1, %v2131_v53 }
 0x1cc   : > { %v950_v50 = vpop.f32.mrf.mxu2 }
 0x1cd   : > { %v1010_v56 = vadd.f32 %v950_v50, %v4417_v14  ;;  %v2133_v50 = vsel %vm2128_vm7, %v2130_v33, %v2132_v12  ;;  %v4419_v14 = vld [vmem:[#allocation10_spill] sm:$0xff] }
 0x1ce   : > { %v1106_v45 = vpop.f32.mrf.mxu3  ;;  %v1861_v0 = vrot.slane %v4419_v14, 3 }
 0x1cf   : > { %v1164_v20 = vadd.f32 %v1104_v38, %v1010_v56  ;;  %v1386_v37 = vpop.f32.mrf.mxu0  ;;  %v1860_v38 = vrot.slane %v3301_v25, 2  ;;  %v4421_v56 = vld [vmem:[#allocation27_spill] sm:$0xff] }
 0x1d0   : > { %v1621_v27 = vpop.f32.mrf.mxu1 }
 0x1d1   : > { %v1444_v39 = vadd.f32 %v1384_v42, %v1164_v20  ;;  %v1862_v20 = vor.u32 %v1861_v0, %v1860_v38 }
 0x1d3   : > { %2931 = vmatmul.msk.bf16.gmra.mxu3 %vm479_vm1, %v1859_v4  ;;  %v3853_v17 = vadd.f32 %v1616_v29, %v1444_v39  ;;  %v1863_v25 = vsel %vm1848_vm6, %v1858_v13, %v1862_v20 }
 0x1d4   : > { %v952_v5 = vpop.f32.mrf.mxu2 }
 0x1d5   : > { %v1011_v53 = vadd.f32 %v952_v5, %v4418_v10 }
 0x1d6   : > { %v1109_v19 = vpop.f32.mrf.mxu3 }
 0x1d7   : > { %v1165_v34 = vadd.f32 %v1106_v45, %v1011_v53  ;;  %v1389_v18 = vpop.f32.mrf.mxu0  ;;  %v4422_v45 = vld [vmem:[#allocation26_spill] sm:$0xff] }
 0x1d8   : > { %v3860_v42 = vpop.f32.mrf.mxu1 }
 0x1d9   : > { %4420 = vst [vmem:[#allocation8_spill] sm:$0xff] %v3860_v42  ;;  %2912 = vmatmul.msk.bf16.gmra.mxu2 %vm479_vm1, %v4421_v56  ;;  %v3864_v29 = vadd.f32 %v1386_v37, %v1165_v34  ;;  %v3042_v56 = vld [vmem:[%s3128_s8 + $0x28] sm:$0xff]  ;;  %v4423_v42 = vld [vmem:[#allocation28_spill] sm:$0xff] }
 0x1da   : > { %2950 = vmatmul.msk.bf16.gmra.mxu0 %vm479_vm1, %v2133_v50  ;;  %v2134_v37 = vrot.slane %v3042_v56, 3 }
 0x1dc   : > { %v955_v4 = vpop.f32.mrf.mxu2 }
 0x1dd   : > { %v1012_v39 = vadd.f32 %v955_v4, %v4422_v45  ;;  %v2135_v4 = vsel %vm2128_vm7, %v2132_v12, %v2134_v37  ;;  %v4424_v45 = vld [vmem:[#allocation11_spill] sm:$0xff] }
 0x1de   : > { %v1111_v1 = vpop.f32.mrf.mxu3  ;;  %v1865_v13 = vrot.slane %v4424_v45, 3 }
 0x1df   : > { %v1166_v33 = vadd.f32 %v1109_v19, %v1012_v39  ;;  %v1391_v5 = vpop.f32.mrf.mxu0  ;;  %v1864_v19 = vrot.slane %v3331_v49, 2  ;;  %v4426_v39 = vld [vmem:[#allocation30_spill] sm:$0xff] }
 0x1e0   : > { %v1626_v10 = vpop.f32.mrf.mxu1 }
 0x1e1   : > { %v1446_v53 = vadd.f32 %v1389_v18, %v1166_v33 }
 0x1e3   : > { %2932 = vmatmul.msk.bf16.gmra.mxu3 %vm479_vm1, %v1863_v25  ;;  %v3870_v14 = vadd.f32 %v1621_v27, %v1446_v53 }
 0x1e4   : > { %v957_v34 = vpop.f32.mrf.mxu2 }
 0x1e5   : > { %v1013_v50 = vadd.f32 %v957_v34, %v4423_v42  ;;  %v1866_v42 = vor.u32 %v1865_v13, %v1864_v19 }
 0x1e6   : > { %v1114_v38 = vpop.f32.mrf.mxu3 }
 0x1e7   : > { %v1167_v0 = vadd.f32 %v1111_v1, %v1013_v50  ;;  %v1394_v16 = vpop.f32.mrf.mxu0  ;;  %v4428_v1 = vld [vmem:[#allocation29_spill] sm:$0xff]  ;;  %v1867_v49 = vsel %vm1848_vm6, %v1862_v20, %v1866_v42 }
 0x1e8   : > { %v3877_v18 = vpop.f32.mrf.mxu1 }
 0x1e9   : > { %4425 = vst [vmem:[#allocation6_spill] sm:$0xff] %v3877_v18  ;;  %2913 = vmatmul.msk.bf16.gmra.mxu2 %vm479_vm1, %v4426_v39  ;;  %v3881_v27 = vadd.f32 %v1391_v5, %v1167_v0  ;;  %v3043_v39 = vld [vmem:[%s3128_s8 + $0x30] sm:$0xff]  ;;  %v4429_v18 = vld [vmem:[#allocation31_spill] sm:$0xff] }
 0x1ea   : > { %2951 = vmatmul.msk.bf16.gmra.mxu0 %vm479_vm1, %v2135_v4  ;;  %v2136_v5 = vrot.slane %v3043_v39, 3 }
 0x1eb   : > { %4427 = vst [vmem:[#allocation22_spill] sm:$0xff] %v3881_v27 }
 0x1ec   : > { %v960_v33 = vpop.f32.mrf.mxu2 }
 0x1ed   : > { %v1014_v25 = vadd.f32 %v960_v33, %v4428_v1  ;;  %v2137_v33 = vsel %vm2128_vm7, %v2134_v37, %v2136_v5  ;;  %v4430_v1 = vld [vmem:[#allocation14_spill] sm:$0xff] }
 0x1ee   : > { %v1116_v53 = vpop.f32.mrf.mxu3  ;;  %v1869_v20 = vrot.slane %v4430_v1, 3 }
 0x1ef   : > { %v1168_v12 = vadd.f32 %v1114_v38, %v1014_v25  ;;  %v1396_v56 = vpop.f32.mrf.mxu0  ;;  %v1868_v38 = vrot.slane %v3361_v9, 2 }
 0x1f0   : > { %v1631_v34 = vpop.f32.mrf.mxu1 }
 0x1f1   : > { %v1448_v50 = vadd.f32 %v1394_v16, %v1168_v12  ;;  %v4431_v16 = vld [vmem:[#allocation33_spill] sm:$0xff] }
 0x1f3   : > { %2933 = vmatmul.msk.bf16.gmra.mxu3 %vm479_vm1, %v1867_v49  ;;  %v3887_v45 = vadd.f32 %v1626_v10, %v1448_v50 }
 0x1f4   : > { %v962_v0 = vpop.f32.mrf.mxu2 }
 0x1f5   : > { %v1015_v4 = vadd.f32 %v962_v0, %v4429_v18  ;;  %v1870_v18 = vor.u32 %v1869_v20, %v1868_v38 }
 0x1f6   : > { %v1119_v19 = vpop.f32.mrf.mxu3 }
 0x1f7   : > { %v1169_v13 = vadd.f32 %v1116_v53, %v1015_v4  ;;  %v1399_v27 = vpop.f32.mrf.mxu0  ;;  %v4434_v53 = vld [vmem:[#allocation32_spill] sm:$0xff]  ;;  %v1871_v9 = vsel %vm1848_vm6, %v1866_v42, %v1870_v18 }
 0x1f8   : > { %v3899_v25 = vpop.f32.mrf.mxu1  ;;  %v4437_v42 = vld [vmem:[#allocation36_spill] sm:$0xff] }
 0x1f9   : > { %2914 = vmatmul.msk.bf16.gmra.mxu2 %vm479_vm1, %v4431_v16  ;;  %v3896_v10 = vadd.f32 %v1396_v56, %v1169_v13  ;;  %4433 = vst [vmem:[#allocation24_spill] sm:$0xff] %v3899_v25  ;;  %v3044_v56 = vld [vmem:[%s3128_s8 + $0x38] sm:$0xff]  ;;  %v4435_v16 = vld [vmem:[#allocation34_spill] sm:$0xff] }
 0x1fa   : > { %2952 = vmatmul.msk.bf16.gmra.mxu0 %vm479_vm1, %v2137_v33  ;;  %v2138_v13 = vrot.slane %v3044_v56, 3 }
 0x1fb   : > { %4432 = vst [vmem:[#allocation9_spill] sm:$0xff] %v3896_v10 }
 0x1fc   : > { %v965_v12 = vpop.f32.mrf.mxu2 }
 0x1fd   : > { %v1016_v49 = vadd.f32 %v965_v12, %v4434_v53  ;;  %v2139_v12 = vsel %vm2128_vm7, %v2136_v5, %v2138_v13  ;;  %v4436_v53 = vld [vmem:[#allocation18_spill] sm:$0xff] }
 0x1fe   : > { %v1121_v50 = vpop.f32.mrf.mxu3 }
 0x1ff   : > { %v1170_v37 = vadd.f32 %v1119_v19, %v1016_v49  ;;  %v1401_v39 = vpop.f32.mrf.mxu0  ;;  %v1872_v19 = vrot.slane %v3397_v51, 2 }
 0x200   : > { %v1636_v33 = vpop.f32.mrf.mxu1 }
 0x201   : > { %v1450_v0 = vadd.f32 %v1399_v27, %v1170_v37  ;;  %v1873_v27 = vrot.slane %v4436_v53, 3 }
 0x203   : > { %2934 = vmatmul.msk.bf16.gmra.mxu3 %vm479_vm1, %v1871_v9  ;;  %v3904_v4 = vadd.f32 %v1631_v34, %v1450_v0  ;;  %v1874_v49 = vor.u32 %v1873_v27, %v1872_v19  ;;  %v4438_v9 = vld [vmem:[#allocation35_spill] sm:$0xff] }
 0x204   : > { %v967_v1 = vpop.f32.mrf.mxu2 }
 0x205   : > { %v1017_v25 = vadd.f32 %v967_v1, %v4435_v16  ;;  %v1875_v51 = vsel %vm1848_vm6, %v1870_v18, %v1874_v49  ;;  %v4442_v18 = vld [vmem:[#allocation39_spill] sm:$0xff] }
 0x206   : > { %v1124_v38 = vpop.f32.mrf.mxu3 }
 0x207   : > { %v1171_v20 = vadd.f32 %v1121_v50, %v1017_v25  ;;  %v1404_v10 = vpop.f32.mrf.mxu0 }
 0x208   : > { %v3917_v50 = vpop.f32.mrf.mxu1 }
 0x209   : > { %2915 = vmatmul.msk.bf16.gmra.mxu2 %vm479_vm1, %v4437_v42  ;;  %v3913_v34 = vadd.f32 %v1401_v39, %v1171_v20  ;;  %4439 = vst [vmem:[#allocation23_spill] sm:$0xff] %v3917_v50  ;;  %v3045_v39 = vld [vmem:[%s3128_s8 + $0x40] sm:$0xff] }
 0x20a   : > { %2953 = vmatmul.msk.bf16.gmra.mxu0 %vm479_vm1, %v2139_v12  ;;  %v2140_v20 = vrot.slane %v3045_v39, 3  ;;  %v4440_v12 = vld [vmem:[#allocation37_spill] sm:$0xff] }
 0x20c   : > { %v970_v37 = vpop.f32.mrf.mxu2 }
 0x20d   : > { %v1018_v0 = vadd.f32 %v970_v37, %v4438_v9  ;;  %v2141_v9 = vsel %vm2128_vm7, %v2138_v13, %v2140_v20 }
 0x20e   : > { %v1126_v25 = vpop.f32.mrf.mxu3 }
 0x20f   : > { %v1172_v5 = vadd.f32 %v1124_v38, %v1018_v0  ;;  %v1406_v56 = vpop.f32.mrf.mxu0  ;;  %v1876_v38 = vrot.slane %v3148_v15, 2  ;;  %v4441_v0 = vld [vmem:[#allocation2_spill] sm:$0xff] }
 0x210   : > { %v1877_v50 = vrot.slane %v4441_v0, 3 }
 0x211   : > { %v1452_v1 = vadd.f32 %v1404_v10, %v1172_v5  ;;  %v1641_v10 = vpop.f32.mrf.mxu1 }
 0x212   : > { %v1878_v5 = vor.u32 %v1877_v50, %v1876_v38 }
 0x213   : > { %2935 = vmatmul.msk.bf16.gmra.mxu3 %vm479_vm1, %v1875_v51  ;;  %v3921_v16 = vadd.f32 %v1636_v33, %v1452_v1  ;;  %v4444_v1 = vld [vmem:[#allocation38_spill] sm:$0xff] }
 0x214   : > { %v972_v53 = vpop.f32.mrf.mxu2  ;;  %v1879_v15 = vsel %vm1848_vm6, %v1874_v49, %v1878_v5  ;;  %v4449_v49 = vld [vmem:[#allocation3_spill] sm:$0xff] }
 0x215   : > { %v1019_v19 = vadd.f32 %v972_v53, %v4440_v12 }
 0x216   : > { %v1129_v27 = vpop.f32.mrf.mxu3 }
 0x217   : > { %v1173_v42 = vadd.f32 %v1126_v25, %v1019_v19  ;;  %v1409_v37 = vpop.f32.mrf.mxu0 }
 0x219   : > { %2916 = vmatmul.msk.bf16.gmra.mxu2 %vm479_vm1, %v4442_v18  ;;  %v3930_v33 = vadd.f32 %v1406_v56, %v1173_v42  ;;  %v3936_v19 = vpop.f32.mrf.mxu1  ;;  %v3046_v56 = vld [vmem:[%s3128_s8 + $0x48] sm:$0xff] }
 0x21a   : > { %2954 = vmatmul.msk.bf16.gmra.mxu0 %vm479_vm1, %v2141_v9  ;;  %4445 = vst [vmem:[#allocation10_spill] sm:$0xff] %v3936_v19  ;;  %v2142_v42 = vrot.slane %v3046_v56, 3  ;;  %v4447_v9 = vld [vmem:[#allocation40_spill] sm:$0xff] }
 0x21b   : > { %4443 = vst [vmem:[#allocation25_spill] sm:$0xff] %v3930_v33 }
 0x21c   : > { %v975_v51 = vpop.f32.mrf.mxu2 }
 0x21d   : > { %v1020_v25 = vadd.f32 %v975_v51, %v4444_v1  ;;  %v4448_v1 = vld [vmem:[#allocation4_spill] sm:$0xff] }
 0x21e   : > { %v1131_v39 = vpop.f32.mrf.mxu3 }
 0x21f   : > { %v1174_v53 = vadd.f32 %v1129_v27, %v1020_v25  ;;  %v1411_v13 = vpop.f32.mrf.mxu0  ;;  %v2143_v27 = vsel %vm2128_vm7, %v2140_v20, %v2142_v42  ;;  %v1880_v25 = vrot.slane %v4448_v1, 2 }
 0x221   : > { %v1454_v12 = vadd.f32 %v1409_v37, %v1174_v53  ;;  %v1881_v37 = vrot.slane %v4449_v49, 3  ;;  %v4450_v53 = vld [vmem:[#allocation42_spill] sm:$0xff]  ;;  %v1646_v56 = vpop.f32.mrf.mxu1 }
 0x223   : > { %2936 = vmatmul.msk.bf16.gmra.mxu3 %vm479_vm1, %v1879_v15  ;;  %v3938_v0 = vadd.f32 %v1641_v10, %v1454_v12  ;;  %v1882_v15 = vor.u32 %v1881_v37, %v1880_v25 }
 0x224   : > { %v977_v18 = vpop.f32.mrf.mxu2 }
 0x225   : > { %4446 = vst [vmem:[#allocation27_spill] sm:$0xff] %v3938_v0  ;;  %v1021_v50 = vadd.f32 %v977_v18, %v4447_v9  ;;  %v4452_v18 = vld [vmem:[#allocation41_spill] sm:$0xff]  ;;  %v1883_v1 = vsel %vm1848_vm6, %v1878_v5, %v1882_v15 }
 0x226   : > { %v1134_v38 = vpop.f32.mrf.mxu3  ;;  %v4456_v5 = vld [vmem:[#allocation5_spill] sm:$0xff] }
 0x227   : > { %v1175_v33 = vadd.f32 %v1131_v39, %v1021_v50  ;;  %v1414_v51 = vpop.f32.mrf.mxu0 }
 0x229   : > { %2917 = vmatmul.msk.bf16.gmra.mxu2 %vm479_vm1, %v4450_v53  ;;  %v3947_v10 = vadd.f32 %v1411_v13, %v1175_v33  ;;  %v3047_v53 = vld [vmem:[%s3128_s8 + $0x50] sm:$0xff]  ;;  %v3957_v37 = vpop.f32.mrf.mxu1 }
 0x22a   : > { %2955 = vmatmul.msk.bf16.gmra.mxu0 %vm479_vm1, %v2143_v27  ;;  %v2144_v33 = vrot.slane %v3047_v53, 3  ;;  %4454 = vst [vmem:[#allocation28_spill] sm:$0xff] %v3957_v37 }
 0x22b   : > { %4451 = vst [vmem:[#allocation26_spill] sm:$0xff] %v3947_v10  ;;  %v4453_v10 = vld [vmem:[#allocation43_spill] sm:$0xff] }
 0x22c   : > { %v980_v12 = vpop.f32.mrf.mxu2 }
 0x22d   : > { %v1022_v39 = vadd.f32 %v980_v12, %v4452_v18  ;;  %v4455_v18 = vld [vmem:[#allocation7_spill] sm:$0xff] }
 0x22e   : > { %v1136_v9 = vpop.f32.mrf.mxu3 }
 0x22f   : > { %v1176_v50 = vadd.f32 %v1134_v38, %v1022_v39  ;;  %v1416_v20 = vpop.f32.mrf.mxu0  ;;  %v2145_v38 = vsel %vm2128_vm7, %v2142_v42, %v2144_v33  ;;  %v1884_v39 = vrot.slane %v4455_v18, 2 }
 0x231   : > { %v1456_v19 = vadd.f32 %v1414_v51, %v1176_v50  ;;  %v1885_v51 = vrot.slane %v4456_v5, 3  ;;  %v4457_v50 = vld [vmem:[#allocation45_spill] sm:$0xff]  ;;  %v1651_v18 = vpop.f32.mrf.mxu1 }
 0x233   : > { %2937 = vmatmul.msk.bf16.gmra.mxu3 %vm479_vm1, %v1883_v1  ;;  %v3953_v49 = vadd.f32 %v1646_v56, %v1456_v19  ;;  %v4459_v1 = vld [vmem:[#allocation44_spill] sm:$0xff] }
 0x234   : > { %v982_v13 = vpop.f32.mrf.mxu2 }
 0x235   : > { %v1023_v27 = vadd.f32 %v982_v13, %v4453_v10  ;;  %v1886_v10 = vor.u32 %v1885_v51, %v1884_v39 }
 0x236   : > { %v1139_v25 = vpop.f32.mrf.mxu3 }
 0x237   : > { %v1177_v0 = vadd.f32 %v1136_v9, %v1023_v27  ;;  %v1419_v12 = vpop.f32.mrf.mxu0  ;;  %v1887_v42 = vsel %vm1848_vm6, %v1882_v15, %v1886_v10  ;;  %v1889_v15 = vrot.slane %v3208_v43, 3 }
 0x239   : > { %2918 = vmatmul.msk.bf16.gmra.mxu2 %vm479_vm1, %v4457_v50  ;;  %v3964_v19 = vadd.f32 %v1416_v20, %v1177_v0  ;;  %v3048_v50 = vld [vmem:[%s3128_s8 + $0x58] sm:$0xff] }
 0x23a   : > { %2956 = vmatmul.msk.bf16.gmra.mxu0 %vm479_vm1, %v2145_v38  ;;  %v2146_v0 = vrot.slane %v3048_v50, 3 }
 0x23b   : > { %4458 = vst [vmem:[#allocation11_spill] sm:$0xff] %v3964_v19  ;;  %v4460_v19 = vld [vmem:[#allocation46_spill] sm:$0xff] }
 0x23c   : > { %v985_v56 = vpop.f32.mrf.mxu2 }
 0x23d   : > { %v1024_v53 = vadd.f32 %v985_v56, %v4459_v1  ;;  %v1888_v1 = vrot.slane %v3235_v54, 2  ;;  %v3049_v54 = vld [vmem:[%s3128_s8 + $0x60] sm:$0xff] }
 0x23e   : > { %v1141_v9 = vpop.f32.mrf.mxu3  ;;  %v2148_v43 = vrot.slane %v3049_v54, 3 }
 0x23f   : > { %v1178_v13 = vadd.f32 %v1139_v25, %v1024_v53  ;;  %v1421_v27 = vpop.f32.mrf.mxu0  ;;  %v2147_v25 = vsel %vm2128_vm7, %v2144_v33, %v2146_v0 }
 0x241   : > { %v1458_v37 = vadd.f32 %v1419_v12, %v1178_v13  ;;  %v1890_v12 = vor.u32 %v1889_v15, %v1888_v1 }
 0x243   : > { %2938 = vmatmul.msk.bf16.gmra.mxu3 %vm479_vm1, %v1887_v42  ;;  %v3970_v5 = vadd.f32 %v1651_v18, %v1458_v37  ;;  %v1891_v42 = vsel %vm1848_vm6, %v1886_v10, %v1890_v12  ;;  %v1892_v10 = vrot.slane %v3265_v2, 2 }
 0x244   : > { %v987_v20 = vpop.f32.mrf.mxu2 }
 0x245   : > { %v1025_v38 = vadd.f32 %v987_v20, %v4460_v19 }
 0x246   : > { %v2000_v39 = vpop.f32.mrf.mxu3 }
 0x247   : > { %v1179_v51 = vadd.f32 %v1141_v9, %v1025_v38  ;;  %v2232_v56 = vpop.f32.mrf.mxu0 }
 0x249   : > { %2919 = vmatmul.msk.bf16.gmra.mxu2 %vm479_vm1, %v3632_v44  ;;  %v3979_v37 = vadd.f32 %v1421_v27, %v1179_v51  ;;  %v3989_v44 = vld [vmem:[%s4296_s2] ss:$0 sm:$0xff]  ;;  %v2149_v51 = vsel %vm2128_vm7, %v2146_v0, %v2148_v43 }
 0x24a   : > { %2957 = vmatmul.msk.bf16.gmra.mxu0 %vm479_vm1, %v2147_v25 }
 0x24c   : > { %v1720_v53 = vpop.f32.mrf.mxu2 }
 0x24d   : > { %v1810_v19 = vadd.f32 %v1720_v53, %v3637_v28 }
 0x24e   : > { %v2002_v9 = vpop.f32.mrf.mxu3 }
 0x24f   : > { %v2234_v13 = vpop.f32.mrf.mxu0  ;;  %v2090_v33 = vadd.f32 %v2000_v39, %v1810_v19  ;;  %v1893_v39 = vrot.slane %v3238_v55, 3 }
 0x251   : > { %v2322_v50 = vadd.f32 %v2232_v56, %v2090_v33  ;;  %v1894_v56 = vor.u32 %v1893_v39, %v1892_v10  ;;  %v1896_v10 = vrot.slane %v3295_v23, 2 }
 0x253   : > { %2939 = vmatmul.msk.bf16.gmra.mxu3 %vm479_vm1, %v1891_v42  ;;  %v2362_v25 = vadd.f32 %v3989_v44, %v2322_v50 }
 0x254   : > { %v1722_v18 = vpop.f32.mrf.mxu2 }
 0x255   : > { %v1811_v27 = vadd.f32 %v1722_v18, %v3644_v61  ;;  %v2398_v53 = vmax.f32 %v2362_v25, 0.0 }
 0x256   : > { %v2005_v20 = vpop.f32.mrf.mxu3 }
 0x257   : > { %v2091_v28 = vadd.f32 %v2002_v9, %v1811_v27  ;;  %v2237_v38 = vpop.f32.mrf.mxu0 }
 0x259   : > { %v2323_v1 = vadd.f32 %v2234_v13, %v2091_v28  ;;  %2920 = vmatmul.msk.bf16.gmra.mxu2 %vm479_vm1, %v3652_v31  ;;  %v1895_v13 = vsel %vm1848_vm6, %v1890_v12, %v1894_v56  ;;  %v3050_v31 = vld [vmem:[%s3128_s8 + $0x68] sm:$0xff]  ;;  %v1897_v12 = vrot.slane %v3268_v3, 3 }
 0x25a   : > { %2958 = vmatmul.msk.bf16.gmra.mxu0 %vm479_vm1, %v2149_v51  ;;  %v2150_v33 = vrot.slane %v3050_v31, 3 }
 0x25b   : > { %v2363_v61 = vadd.f32 %v3989_v44, %v2323_v1 }
 0x25c   : > { %v1725_v15 = vpop.f32.mrf.mxu2  ;;  %v2151_v51 = vsel %vm2128_vm7, %v2148_v43, %v2150_v33 }
 0x25d   : > { %v2399_v19 = vmax.f32 %v2363_v61, 0.0  ;;  %v1812_v0 = vadd.f32 %v1725_v15, %v3657_v40 }
 0x25e   : > { %v2007_v2 = vpop.f32.mrf.mxu3 }
 0x25f   : > { %v2434_v55 = vpack.c.bf16 %v2399_v19, %v2398_v53  ;;  %v2239_v9 = vpop.f32.mrf.mxu0  ;;  %v2092_v42 = vadd.f32 %v2005_v20, %v1812_v0 }
 0x261   : > { %2975 = vmatmul.msk.bf16.vlgmr.msra.gmra.mxu1 %vm2472_vm8, %v2434_v55  ;;  %v2324_v18 = vadd.f32 %v2237_v38, %v2092_v42  ;;  %v1898_v38 = vor.u32 %v1897_v12, %v1896_v10 }
 0x263   : > { %2940 = vmatmul.msk.bf16.gmra.mxu3 %vm479_vm1, %v1895_v13  ;;  %v2364_v20 = vadd.f32 %v3989_v44, %v2324_v18  ;;  %v1899_v53 = vsel %vm1848_vm6, %v1894_v56, %v1898_v38  ;;  %v1901_v56 = vrot.slane %v3298_v24, 3 }
 0x264   : > { %v1727_v54 = vpop.f32.mrf.mxu2 }
 0x265   : > { %v1813_v50 = vadd.f32 %v1727_v54, %v3664_v63  ;;  %v2400_v1 = vmax.f32 %v2364_v20, 0.0  ;;  %v1900_v54 = vrot.slane %v3325_v47, 2 }
 0x266   : > { %v2010_v27 = vpop.f32.mrf.mxu3 }
 0x267   : > { %v2093_v28 = vadd.f32 %v2007_v2, %v1813_v50  ;;  %v2242_v40 = vpop.f32.mrf.mxu0 }
 0x269   : > { %v2325_v39 = vadd.f32 %v2239_v9, %v2093_v28  ;;  %2921 = vmatmul.msk.bf16.gmra.mxu2 %vm479_vm1, %v3672_v46  ;;  %v3051_v46 = vld [vmem:[%s3128_s8 + $0x70] sm:$0xff] }
 0x26a   : > { %2959 = vmatmul.msk.bf16.gmra.mxu0 %vm479_vm1, %v2151_v51  ;;  %v2152_v0 = vrot.slane %v3051_v46, 3 }
 0x26b   : > { %v2365_v63 = vadd.f32 %v3989_v44, %v2325_v39 }
 0x26c   : > { %v1730_v25 = vpop.f32.mrf.mxu2 }
 0x26d   : > { %v2401_v61 = vmax.f32 %v2365_v63, 0.0  ;;  %v1814_v43 = vadd.f32 %v1730_v25, %v3677_v52  ;;  %v2153_v52 = vsel %vm2128_vm7, %v2150_v33, %v2152_v0 }
 0x26e   : > { %v2012_v23 = vpop.f32.mrf.mxu3 }
 0x26f   : > { %v2244_v15 = vpop.f32.mrf.mxu0  ;;  %v2435_v3 = vpack.c.bf16 %v2401_v61, %v2400_v1  ;;  %v2094_v19 = vadd.f32 %v2010_v27, %v1814_v43  ;;  %v1902_v27 = vor.u32 %v1901_v56, %v1900_v54  ;;  %v3053_v54 = vld [vmem:[%s3128_s8 + $0x80] sm:$0xff] }
 0x270   : > { %v2156_v56 = vrot.slane %v3053_v54, 3 }
 0x271   : > { %2976 = vmatmul.msk.bf16.gmra.mxu1 %vm2472_vm8, %v2435_v3  ;;  %v2326_v55 = vadd.f32 %v2242_v40, %v2094_v19  ;;  %v1903_v12 = vsel %vm1848_vm6, %v1898_v38, %v1902_v27  ;;  %v1905_v38 = vrot.slane %v4396_v59, 3  ;;  %v4461_v19 = vld [vmem:[#allocation47_spill] sm:$0xff] }
 0x273   : > { %2941 = vmatmul.msk.bf16.gmra.mxu3 %vm479_vm1, %v1899_v53  ;;  %v2366_v18 = vadd.f32 %v3989_v44, %v2326_v55 }
 0x274   : > { %v1732_v2 = vpop.f32.mrf.mxu2 }
 0x275   : > { %v1815_v9 = vadd.f32 %v1732_v2, %v3684_v60  ;;  %v2402_v40 = vmax.f32 %v2366_v18, 0.0 }
 0x276   : > { %v2015_v13 = vpop.f32.mrf.mxu3 }
 0x277   : > { %v2095_v42 = vadd.f32 %v2012_v23, %v1815_v9  ;;  %v2247_v31 = vpop.f32.mrf.mxu0 }
 0x279   : > { %v2327_v50 = vadd.f32 %v2244_v15, %v2095_v42  ;;  %2922 = vmatmul.msk.bf16.gmra.mxu2 %vm479_vm1, %v3692_v48  ;;  %v3052_v48 = vld [vmem:[%s3128_s8 + $0x78] sm:$0xff]  ;;  %v1904_v15 = vrot.slane %v4395_v32, 2 }
 0x27a   : > { %2960 = vmatmul.msk.bf16.gmra.mxu0 %vm479_vm1, %v2153_v52  ;;  %v2154_v39 = vrot.slane %v3052_v48, 3 }
 0x27b   : > { %v2367_v60 = vadd.f32 %v3989_v44, %v2327_v50  ;;  %v1906_v46 = vor.u32 %v1905_v38, %v1904_v15 }
 0x27c   : > { %v1735_v28 = vpop.f32.mrf.mxu2 }
 0x27d   : > { %v2403_v51 = vmax.f32 %v2367_v60, 0.0  ;;  %v1816_v33 = vadd.f32 %v1735_v28, %v3697_v57  ;;  %v2155_v57 = vsel %vm2128_vm7, %v2152_v0, %v2154_v39  ;;  %v4462_v0 = vld [vmem:[#allocation48_spill] sm:$0xff] }
 0x27e   : > { %v2017_v47 = vpop.f32.mrf.mxu3  ;;  %v4463_v60 = vld [vmem:[#allocation12_spill] sm:$0xff] }
 0x27f   : > { %v2249_v10 = vpop.f32.mrf.mxu0  ;;  %v2436_v24 = vpack.c.bf16 %v2403_v51, %v2402_v40  ;;  %v2096_v20 = vadd.f32 %v2015_v13, %v1816_v33 }
 0x281   : > { %2977 = vmatmul.msk.bf16.gmra.mxu1 %vm2472_vm8, %v2436_v24  ;;  %v2328_v25 = vadd.f32 %v2247_v31, %v2096_v20  ;;  %v1907_v31 = vsel %vm1848_vm6, %v1902_v27, %v1906_v46  ;;  %v1909_v27 = vrot.slane %v4402_v58, 3 }
 0x283   : > { %2942 = vmatmul.msk.bf16.gmra.mxu3 %vm479_vm1, %v1903_v12  ;;  %v2368_v3 = vadd.f32 %v3989_v44, %v2328_v25 }
 0x284   : > { %v1737_v63 = vpop.f32.mrf.mxu2 }
 0x285   : > { %v1817_v1 = vadd.f32 %v1737_v63, %v3704_v30  ;;  %v2404_v55 = vmax.f32 %v2368_v3, 0.0 }
 0x286   : > { %v2020_v61 = vpop.f32.mrf.mxu3 }
 0x287   : > { %v2097_v43 = vadd.f32 %v2017_v47, %v1817_v1  ;;  %v2252_v23 = vpop.f32.mrf.mxu0  ;;  %v2157_v47 = vsel %vm2128_vm7, %v2154_v39, %v2156_v56  ;;  %v4464_v39 = vld [vmem:[#allocation16_spill] sm:$0xff] }
 0x289   : > { %v2329_v53 = vadd.f32 %v2249_v10, %v2097_v43  ;;  %2923 = vmatmul.msk.bf16.gmra.mxu2 %vm479_vm1, %v4461_v19  ;;  %v1908_v10 = vrot.slane %v4401_v62, 2 }
 0x28a   : > { %2961 = vmatmul.msk.bf16.gmra.mxu0 %vm479_vm1, %v2155_v57 }
 0x28b   : > { %v2369_v30 = vadd.f32 %v3989_v44, %v2329_v53  ;;  %v1910_v48 = vor.u32 %v1909_v27, %v1908_v10  ;;  %v4465_v53 = vld [vmem:[#allocation15_spill] sm:$0xff] }
 0x28c   : > { %v1740_v2 = vpop.f32.mrf.mxu2 }
 0x28d   : > { %v2405_v9 = vmax.f32 %v2369_v30, 0.0  ;;  %v1818_v13 = vadd.f32 %v1740_v2, %v4462_v0  ;;  %v4466_v0 = vld [vmem:[#allocation19_spill] sm:$0xff] }
 0x28e   : > { %v2022_v32 = vpop.f32.mrf.mxu3 }
 0x28f   : > { %v2254_v42 = vpop.f32.mrf.mxu0  ;;  %v2437_v59 = vpack.c.bf16 %v2405_v9, %v2404_v55  ;;  %v2098_v52 = vadd.f32 %v2020_v61, %v1818_v13  ;;  %v4467_v13 = vshrl.u32 %v4466_v0, 16 }
 0x291   : > { %2978 = vmatmul.msk.bf16.gmra.mxu1 %vm2472_vm8, %v2437_v59  ;;  %v2330_v50 = vadd.f32 %v2252_v23, %v2098_v52  ;;  %v1911_v23 = vsel %vm1848_vm6, %v1906_v46, %v1910_v48  ;;  %v4468_v46 = vshll.u32 %v4466_v0, 16  ;;  %v4469_v52 = vld [vmem:[#allocation21_spill] sm:$0xff] }
 0x293   : > { %2943 = vmatmul.msk.bf16.gmra.mxu3 %vm479_vm1, %v1907_v31  ;;  %v2370_v24 = vadd.f32 %v3989_v44, %v2330_v50 }
 0x294   : > { %v1742_v18 = vpop.f32.mrf.mxu2 }
 0x295   : > { %v1819_v28 = vadd.f32 %v1742_v18, %v4463_v60  ;;  %v2406_v25 = vmax.f32 %v2370_v24, 0.0  ;;  %v4471_v24 = vld [vmem:[#allocation50_spill] sm:$0xff] }
 0x296   : > { %v2025_v40 = vpop.f32.mrf.mxu3 }
 0x297   : > { %v2099_v51 = vadd.f32 %v2022_v32, %v1819_v28  ;;  %v2257_v33 = vpop.f32.mrf.mxu0  ;;  %v1912_v32 = vrot.slane %v4467_v13, 2  ;;  %v4470_v28 = vld [vmem:[#allocation17_spill] sm:$0xff] }
 0x299   : > { %v2331_v12 = vadd.f32 %v2254_v42, %v2099_v51  ;;  %2924 = vmatmul.msk.bf16.gmra.mxu2 %vm479_vm1, %v3732_v36  ;;  %v3054_v36 = vld [vmem:[%s3128_s8 + $0x88] sm:$0xff]  ;;  %v1913_v42 = vrot.slane %v4468_v46, 3 }
 0x29a   : > { %2962 = vmatmul.msk.bf16.gmra.mxu0 %vm479_vm1, %v2157_v47  ;;  %v2158_v15 = vrot.slane %v3054_v36, 3 }
 0x29b   : > { %v2371_v20 = vadd.f32 %v3989_v44, %v2331_v12  ;;  %v1914_v18 = vor.u32 %v1913_v42, %v1912_v32  ;;  %v4472_v12 = vld [vmem:[#allocation13_spill] sm:$0xff]  ;;  %v4473_v32 = vld [vmem:[#allocation51_spill] sm:$0xff] }
 0x29c   : > { %v1745_v63 = vpop.f32.mrf.mxu2  ;;  %v2159_v9 = vsel %vm2128_vm7, %v2156_v56, %v2158_v15 }
 0x29d   : > { %v2407_v1 = vmax.f32 %v2371_v20, 0.0  ;;  %v1820_v61 = vadd.f32 %v1745_v63, %v4464_v39  ;;  %v1915_v10 = vsel %vm1848_vm6, %v1910_v48, %v1914_v18  ;;  %v1669_v20 = vadd.f32 %v4472_v12, %v4471_v24  ;;  %v3055_v63 = vld [vmem:[%s3128_s8 + $0x90] sm:$0xff]  }
 0x29e   : > { %v2027_v62 = vpop.f32.mrf.mxu3  ;;  %v1920_v39 = vshll.u32 %v3790_v26, 16 }
 0x29f   : > { %v2259_v43 = vpop.f32.mrf.mxu0  ;;  %v2438_v58 = vpack.c.bf16 %v2407_v1, %v2406_v25  ;;  %v2100_v57 = vadd.f32 %v2025_v40, %v1820_v61  ;;  %v2160_v25 = vrot.slane %v3055_v63, 3  ;;  %v1917_v1 = vshrl.u32 %v3790_v26, 16 }
 0x2a1   : > { %2979 = vmatmul.msk.bf16.gmra.mxu1 %vm2472_vm8, %v2438_v58  ;;  %v2332_v3 = vadd.f32 %v2257_v33, %v2100_v57  ;;  %v2161_v57 = vsel %vm2128_vm7, %v2158_v15, %v2160_v25  ;;  %v1919_v36 = vrot.slane %v1917_v1, 2 }
 0x2a3   : > { %2944 = vmatmul.msk.bf16.gmra.mxu3 %vm479_vm1, %v1911_v23  ;;  %v2372_v59 = vadd.f32 %v3989_v44, %v2332_v3  ;;  %v266_v3 = vld [vmem:[%s3128_s8 + $0xa0] sm:$0xf] }
 0x2a4   : > { %v1747_v38 = vpop.f32.mrf.mxu2 }
 0x2a5   : > { %v1821_v19 = vadd.f32 %v1747_v38, %v4465_v53  ;;  %v2408_v56 = vmax.f32 %v2372_v59, 0.0  ;;  %v1922_v38 = vrot.slane %v1920_v39, 3 }
 0x2a6   : > { %v2030_v30 = vpop.f32.mrf.mxu3 }
 0x2a7   : > { %v2101_v2 = vadd.f32 %v2027_v62, %v1821_v19  ;;  %v2262_v55 = vpop.f32.mrf.mxu0 }
 0x2a9   : > { %v2333_v31 = vadd.f32 %v2259_v43, %v2101_v2  ;;  %2925 = vmatmul.msk.bf16.gmra.mxu2 %vm479_vm1, %v4469_v52  ;;  %v1923_v2 = vor.u32 %v1922_v38, %v1919_v36  ;;  %v4475_v38 = vld [vmem:[#allocation52_spill] sm:$0xff] }
 0x2aa   : > { %2963 = vmatmul.msk.bf16.gmra.mxu0 %vm479_vm1, %v2159_v9 }
 0x2ab   : > { %v2373_v54 = vadd.f32 %v3989_v44, %v2333_v31  ;;  %v1924_v31 = vsel %vm1848_vm6, %v1914_v18, %v1923_v2 }
 0x2ac   : > { %v1750_v50 = vpop.f32.mrf.mxu2 }
 0x2ad   : > { %v2409_v60 = vmax.f32 %v2373_v54, 0.0  ;;  %v1822_v40 = vadd.f32 %v1750_v50, %v4470_v28  ;;  %v4474_v50 = vld [vmem:[#allocation49_spill] sm:$0xff] }
 0x2ae   : > { %v2032_v51 = vpop.f32.mrf.mxu3 }
 0x2af   : > { %v2264_v33 = vpop.f32.mrf.mxu0  ;;  %v2439_v47 = vpack.c.bf16 %v2409_v60, %v2408_v56  ;;  %v2102_v27 = vadd.f32 %v2030_v30, %v1822_v40  ;;  %v1671_v56 = vadd.f32 %v4474_v50, %v3803_v6  ;;  %v2162_v60 = vrot.slane %v3790_v26, 3 }
 0x2b1   : > { %2980 = vmatmul.msk.bf16.gmra.mxu1 %vm2472_vm8, %v2439_v47  ;;  %v2334_v62 = vadd.f32 %v2262_v55, %v2102_v27  ;;  %v307_v55 = vunpack.c.l.bf16 %v266_v3  ;;  %v2163_v12 = vsel %vm2128_vm7, %v2160_v25, %v2162_v60  ;;  %v1673_v3 = vadd.f32 %v4475_v38, %v3829_v11 }
 0x2b3   : > { %2945 = vmatmul.msk.bf16.gmra.mxu3 %vm479_vm1, %v1915_v10  ;;  %v2374_v53 = vadd.f32 %v3989_v44, %v2334_v62  ;;  %v1693_v52 = vpack.c.bf16 %v307_v55, %v307_v55 }
 0x2b4   : > { %v1752_v61 = vpop.f32.mrf.mxu2 }
 0x2b5   : > { %v1823_v43 = vadd.f32 %v1752_v61, %v1669_v20  ;;  %v2410_v0 = vmax.f32 %v2374_v53, 0.0  ;;  %v1926_v28 = vshrl.u32 %v1693_v52, 16  ;;  %v1929_v40 = vshll.u32 %v1693_v52, 16 }
 0x2b6   : > { %v2035_v58 = vpop.f32.mrf.mxu3  ;;  %v1700_v36 = vrot.slane %v1693_v52, 2  ;;  %v2164_v53 = vrot.slane %v1693_v52, 3 }
 0x2b7   : > { %v2103_v48 = vadd.f32 %v2032_v51, %v1823_v43  ;;  %v2267_v23 = vpop.f32.mrf.mxu0  ;;  %v1928_v20 = vrot.slane %v1926_v28, 2  ;;  %v1931_v63 = vrot.slane %v1929_v40, 3 }
 0x2b9   : > { %v2335_v19 = vadd.f32 %v2264_v33, %v2103_v48  ;;  %2926 = vmatmul.msk.bf16.gmra.mxu2 %vm479_vm1, %v3787_v41  ;;  %v1698_v41 = vrot.slane %v3790_v26, 2  ;;  %v1932_v39 = vor.u32 %v1931_v63, %v1928_v20 }
 0x2ba   : > { %2964 = vmatmul.msk.bf16.gmra.mxu0 %vm479_vm1, %v2161_v57 }
 0x2bb   : > { %v2375_v30 = vadd.f32 %v3989_v44, %v2335_v19  ;;  %v1699_v18 = vsel %vm1462_vm4, %v3776_v7, %v1698_v41 }
 0x2bc   : > { %v1755_v9 = vpop.f32.mrf.mxu2 }
 0x2bd   : > { %v2411_v13 = vmax.f32 %v2375_v30, 0.0  ;;  %v1824_v15 = vadd.f32 %v1755_v9, %v4473_v32  ;;  %v4109_v9 = vpop.f32.mrf.mxu1  ;;  %v2165_v32 = vsel %vm2128_vm7, %v2162_v60, %v2164_v53 }
 0x2be   : > { %v2037_v46 = vpop.f32.mrf.mxu3 }
 0x2bf   : > { %v2269_v42 = vpop.f32.mrf.mxu0  ;;  %v2440_v59 = vpack.c.bf16 %v2411_v13, %v2410_v0  ;;  %v2104_v54 = vadd.f32 %v2035_v58, %v1824_v15  ;;  %v1701_v0 = vsel %vm1462_vm4, %v1698_v41, %v1700_v36 }
 0x2c1   : > { %2981 = vmatmul.msk.bf16.gmra.mxu1 %vm2472_vm8, %v2440_v59  ;;  %v2336_v33 = vadd.f32 %v2267_v23, %v2104_v54  ;;  %v1933_v23 = vsel %vm1848_vm6, %v1923_v2, %v1932_v39 }
 0x2c3   : > { %2946 = vmatmul.msk.bf16.gmra.mxu3 %vm479_vm1, %v1924_v31  ;;  %v2376_v1 = vadd.f32 %v3989_v44, %v2336_v33 }
 0x2c4   : > { %v1757_v51 = vpop.f32.mrf.mxu2 }
 0x2c5   : > { %v1825_v47 = vadd.f32 %v1757_v51, %v1671_v56  ;;  %v2412_v62 = vmax.f32 %v2376_v1, 0.0 }
 0x2c6   : > { %v2040_v10 = vpop.f32.mrf.mxu3 }
 0x2c7   : > { %v2105_v27 = vadd.f32 %v2037_v46, %v1825_v47  ;;  %v2272_v24 = vpop.f32.mrf.mxu0 }
 0x2c9   : > { %v2337_v6 = vadd.f32 %v2269_v42, %v2105_v27  ;;  %2927 = vmatmul.msk.bf16.gmra.mxu2 %vm479_vm1, %v1699_v18  ;;  %v4121_v42 = vld [vmem:[%s4298_s4] ss:$0 sm:$0xff] }
 0x2ca   : > { %2965 = vmatmul.msk.bf16.gmra.mxu0 %vm479_vm1, %v2163_v12 }
 0x2cb   : > { %v2377_v26 = vadd.f32 %v3989_v44, %v2337_v6 }
 0x2cc   : > { %v1760_v61 = vpop.f32.mrf.mxu2 }
 0x2cd   : > { %v2413_v43 = vmax.f32 %v2377_v26, 0.0  ;;  %v1826_v7 = vadd.f32 %v1760_v61, %v3816_v8 }
 0x2ce   : > { %v2042_v58 = vpop.f32.mrf.mxu3 }
 0x2cf   : > { %v2274_v48 = vpop.f32.mrf.mxu0  ;;  %v2441_v25 = vpack.c.bf16 %v2413_v43, %v2412_v62  ;;  %v2106_v57 = vadd.f32 %v2040_v10, %v1826_v7 }
 0x2d1   : > { %2982 = vmatmul.msk.bf16.gmra.mxu1 %vm2472_vm8, %v2441_v25  ;;  %v2338_v30 = vadd.f32 %v2272_v24, %v2106_v57 }
 0x2d3   : > { %2947 = vmatmul.msk.bf16.gmra.mxu3 %vm479_vm1, %v1933_v23  ;;  %v2378_v15 = vadd.f32 %v3989_v44, %v2338_v30 }
 0x2d4   : > { %v1762_v19 = vpop.f32.mrf.mxu2 }
 0x2d5   : > { %v1827_v55 = vadd.f32 %v1762_v19, %v1673_v3  ;;  %v2414_v31 = vmax.f32 %v2378_v15, 0.0 }
 0x2d6   : > { %v2045_v8 = vpop.f32.mrf.mxu3 }
 0x2d7   : > { %v2107_v2 = vadd.f32 %v2042_v58, %v1827_v55  ;;  %v2277_v13 = vpop.f32.mrf.mxu0 }
 0x2d9   : > { %v2339_v46 = vadd.f32 %v2274_v48, %v2107_v2  ;;  %2928 = vmatmul.msk.bf16.gmra.mxu2 %vm479_vm1, %v1701_v0  ;;  %v4476_v48 = vld [vmem:[#allocation20_spill] sm:$0xff] }
 0x2da   : > { %2966 = vmatmul.msk.bf16.gmra.mxu0 %vm479_vm1, %v2165_v32  ;;  %v1677_v25 = vadd.f32 %v4476_v48, %v3864_v29 }
 0x2db   : > { %v2379_v11 = vadd.f32 %v3989_v44, %v2339_v46 }
 0x2dc   : > { %v1765_v59 = vpop.f32.mrf.mxu2 }
 0x2dd   : > { %v2415_v52 = vmax.f32 %v2379_v11, 0.0  ;;  %v1828_v54 = vadd.f32 %v1765_v59, %v3835_v35  ;;  %v1675_v35 = vadd.f32 %v3826_v22, %v3847_v21 }
 0x2de   : > { %v2047_v41 = vpop.f32.mrf.mxu3  ;;  %v2536_v50 = vpop.f32.mrf.mxu1 }
 0x2df   : > { %v2537_v56 = vadd.f32 %v4121_v42, %v2536_v50  ;;  %v2279_v60 = vpop.f32.mrf.mxu0  ;;  %v2442_v28 = vpack.c.bf16 %v2415_v52, %v2414_v31  ;;  %v2108_v40 = vadd.f32 %v2045_v8, %v1828_v54  ;;  %v4477_v52 = vld [vmem:[#allocation22_spill] sm:$0xff]  ;;  %v4478_v54 = vld [vmem:[#allocation8_spill] sm:$0xff] }
 0x2e1   : > { %2627 = vst.msk [vmem:[%s4127_s30] sm:$0xff] %vm2626_vm9, %v2537_v56  ;;  %2983 = vmatmul.msk.bf16.gmra.mxu1 %vm2472_vm8, %v2442_v28  ;;  %v2340_v33 = vadd.f32 %v2277_v13, %v2108_v40 }
 0x2e3   : > { %v2380_v20 = vadd.f32 %v3989_v44, %v2340_v33 }
 0x2e4   : > { %v1767_v51 = vpop.f32.mrf.mxu2 }
 0x2e5   : > { %v1829_v47 = vadd.f32 %v1767_v51, %v1675_v35  ;;  %v2416_v26 = vmax.f32 %v2380_v20, 0.0 }
 0x2e6   : > { %v2050_v10 = vpop.f32.mrf.mxu3  ;;  %v2538_v18 = vpop.f32.mrf.mxu1 }
 0x2e7   : > { %v2109_v27 = vadd.f32 %v2047_v41, %v1829_v47  ;;  %v2539_v24 = vadd.f32 %v4121_v42, %v2538_v18  ;;  %v2282_v12 = vpop.f32.mrf.mxu0  ;;  %v1679_v41 = vadd.f32 %v4478_v54, %v4477_v52 }
 0x2e9   : > { %v2341_v63 = vadd.f32 %v2279_v60, %v2109_v27  ;;  %2628 = vst.msk [vmem:[%s4127_s30 + $0x8] sm:$0xff] %vm2626_vm9, %v2539_v24 }
 0x2eb   : > { %v2381_v1 = vadd.f32 %v3989_v44, %v2341_v63 }
 0x2ec   : > { %v1770_v6 = vpop.f32.mrf.mxu2 }
 0x2ed   : > { %v2417_v22 = vmax.f32 %v2381_v1, 0.0  ;;  %v1830_v21 = vadd.f32 %v1770_v6, %v3853_v17 }
 0x2ee   : > { %v2052_v39 = vpop.f32.mrf.mxu3  ;;  %v2541_v61 = vpop.f32.mrf.mxu1 }
 0x2ef   : > { %v2542_v62 = vadd.f32 %v4121_v42, %v2541_v61  ;;  %v2284_v43 = vpop.f32.mrf.mxu0  ;;  %v2443_v7 = vpack.c.bf16 %v2417_v22, %v2416_v26  ;;  %v2110_v58 = vadd.f32 %v2050_v10, %v1830_v21  ;;  %v4479_v21 = vld [vmem:[#allocation9_spill] sm:$0xff] }
 0x2f1   : > { %2629 = vst.msk [vmem:[%s4127_s30 + $0x10] sm:$0xff] %vm2626_vm9, %v2542_v62  ;;  %2984 = vmatmul.msk.bf16.gmra.mxu1 %vm2472_vm8, %v2443_v7  ;;  %v2342_v57 = vadd.f32 %v2282_v12, %v2110_v58 }
 0x2f3   : > { %v2382_v30 = vadd.f32 %v3989_v44, %v2342_v57 }
 0x2f4   : > { %v1772_v23 = vpop.f32.mrf.mxu2 }
 0x2f5   : > { %v1831_v36 = vadd.f32 %v1772_v23, %v1677_v25  ;;  %v2418_v2 = vmax.f32 %v2382_v30, 0.0 }
 0x2f6   : > { %v2055_v38 = vpop.f32.mrf.mxu3  ;;  %v2543_v17 = vpop.f32.mrf.mxu1 }
 0x2f7   : > { %v2111_v3 = vadd.f32 %v2052_v39, %v1831_v36  ;;  %v2544_v53 = vadd.f32 %v4121_v42, %v2543_v17  ;;  %v2287_v19 = vpop.f32.mrf.mxu0  ;;  %v4480_v39 = vld [vmem:[#allocation6_spill] sm:$0xff] }
 0x2f8   : > { %v1681_v61 = vadd.f32 %v4480_v39, %v4479_v21 }
 0x2f9   : > { %v2343_v55 = vadd.f32 %v2284_v43, %v2111_v3  ;;  %2630 = vst.msk [vmem:[%s4127_s30 + $0x18] sm:$0xff] %vm2626_vm9, %v2544_v53 }
 0x2fb   : > { %v2383_v8 = vadd.f32 %v3989_v44, %v2343_v55 }
 0x2fc   : > { %v1775_v0 = vpop.f32.mrf.mxu2 }
 0x2fd   : > { %v2419_v29 = vmax.f32 %v2383_v8, 0.0  ;;  %v1832_v13 = vadd.f32 %v1775_v0, %v3870_v14 }
 0x2fe   : > { %v2057_v32 = vpop.f32.mrf.mxu3  ;;  %v2546_v15 = vpop.f32.mrf.mxu1 }
 0x2ff   : > { %v2547_v46 = vadd.f32 %v4121_v42, %v2546_v15  ;;  %v2289_v11 = vpop.f32.mrf.mxu0  ;;  %v2444_v59 = vpack.c.bf16 %v2419_v29, %v2418_v2  ;;  %v2112_v31 = vadd.f32 %v2055_v38, %v1832_v13  ;;  %v4481_v13 = vld [vmem:[#allocation24_spill] sm:$0xff] }
 0x301   : > { %2631 = vst.msk [vmem:[%s4127_s30 + $0x20] sm:$0xff] %vm2626_vm9, %v2547_v46  ;;  %2985 = vmatmul.msk.bf16.gmra.mxu1 %vm2472_vm8, %v2444_v59  ;;  %v2344_v56 = vadd.f32 %v2287_v19, %v2112_v31 }
 0x303   : > { %v2384_v33 = vadd.f32 %v3989_v44, %v2344_v56 }
 0x304   : > { %v1777_v50 = vpop.f32.mrf.mxu2 }
 0x305   : > { %v1833_v60 = vadd.f32 %v1777_v50, %v1679_v41  ;;  %v2420_v27 = vmax.f32 %v2384_v33, 0.0 }
 0x306   : > { %v2060_v28 = vpop.f32.mrf.mxu3  ;;  %v2548_v14 = vpop.f32.mrf.mxu1 }
 0x307   : > { %v2113_v40 = vadd.f32 %v2057_v32, %v1833_v60  ;;  %v2549_v35 = vadd.f32 %v4121_v42, %v2548_v14  ;;  %v2292_v51 = vpop.f32.mrf.mxu0  ;;  %v1683_v32 = vadd.f32 %v4481_v13, %v3913_v34 }
 0x309   : > { %v2345_v47 = vadd.f32 %v2289_v11, %v2113_v40  ;;  %2632 = vst.msk [vmem:[%s4127_s30 + $0x28] sm:$0xff] %vm2626_vm9, %v2549_v35 }
 0x30b   : > { %v2385_v10 = vadd.f32 %v3989_v44, %v2345_v47 }
 0x30c   : > { %v1780_v18 = vpop.f32.mrf.mxu2 }
 0x30d   : > { %v2421_v24 = vmax.f32 %v2385_v10, 0.0  ;;  %v1834_v12 = vadd.f32 %v1780_v18, %v3887_v45  ;;  %v4482_v18 = vld [vmem:[#allocation25_spill] sm:$0xff] }
 0x30e   : > { %v2062_v20 = vpop.f32.mrf.mxu3  ;;  %v2551_v63 = vpop.f32.mrf.mxu1 }
 0x30f   : > { %v2552_v1 = vadd.f32 %v4121_v42, %v2551_v63  ;;  %v2294_v6 = vpop.f32.mrf.mxu0  ;;  %v2445_v26 = vpack.c.bf16 %v2421_v24, %v2420_v27  ;;  %v2114_v22 = vadd.f32 %v2060_v28, %v1834_v12  ;;  %v4483_v27 = vld [vmem:[#allocation23_spill] sm:$0xff] }
 0x310   : > { %v1685_v24 = vadd.f32 %v4483_v27, %v4482_v18 }
 0x311   : > { %2633 = vst.msk [vmem:[%s4127_s30 + $0x30] sm:$0xff] %vm2626_vm9, %v2552_v1  ;;  %2986 = vmatmul.msk.bf16.gmra.mxu1 %vm2472_vm8, %v2445_v26  ;;  %v2346_v43 = vadd.f32 %v2292_v51, %v2114_v22 }
 0x313   : > { %v2386_v57 = vadd.f32 %v3989_v44, %v2346_v43 }
 0x314   : > { %v1782_v62 = vpop.f32.mrf.mxu2 }
 0x315   : > { %v1835_v7 = vadd.f32 %v1782_v62, %v1681_v61  ;;  %v2422_v3 = vmax.f32 %v2386_v57, 0.0 }
 0x316   : > { %v2065_v58 = vpop.f32.mrf.mxu3  ;;  %v2553_v45 = vpop.f32.mrf.mxu1 }
 0x317   : > { %v2115_v48 = vadd.f32 %v2062_v20, %v1835_v7  ;;  %v2554_v25 = vadd.f32 %v4121_v42, %v2553_v45  ;;  %v2297_v23 = vpop.f32.mrf.mxu0 }
 0x319   : > { %v2347_v36 = vadd.f32 %v2294_v6, %v2115_v48  ;;  %2634 = vst.msk [vmem:[%s4127_s30 + $0x38] sm:$0xff] %vm2626_vm9, %v2554_v25 }
 0x31b   : > { %v2387_v38 = vadd.f32 %v3989_v44, %v2347_v36 }
 0x31c   : > { %v1785_v17 = vpop.f32.mrf.mxu2 }
 0x31d   : > { %v2423_v53 = vmax.f32 %v2387_v38, 0.0  ;;  %v1836_v19 = vadd.f32 %v1785_v17, %v3904_v4  ;;  %v4485_v17 = vld [vmem:[#allocation26_spill] sm:$0xff] }
 0x31e   : > { %v2067_v30 = vpop.f32.mrf.mxu3  ;;  %v2556_v55 = vpop.f32.mrf.mxu1 }
 0x31f   : > { %v2557_v8 = vadd.f32 %v4121_v42, %v2556_v55  ;;  %v2299_v0 = vpop.f32.mrf.mxu0  ;;  %v2446_v2 = vpack.c.bf16 %v2423_v53, %v2422_v3  ;;  %v2116_v29 = vadd.f32 %v2065_v58, %v1836_v19  ;;  %v4484_v58 = vld [vmem:[#allocation27_spill] sm:$0xff]  ;;  %v4486_v3 = vld [vmem:[#allocation10_spill] sm:$0xff] }
 0x320   : > { %v1687_v53 = vadd.f32 %v4486_v3, %v4485_v17 }
 0x321   : > { %2635 = vst.msk [vmem:[%s4127_s30 + $0x40] sm:$0xff] %vm2626_vm9, %v2557_v8  ;;  %2987 = vmatmul.msk.bf16.gmra.mxu1 %vm2472_vm8, %v2446_v2  ;;  %v2348_v46 = vadd.f32 %v2297_v23, %v2116_v29 }
 0x323   : > { %v2388_v41 = vadd.f32 %v3989_v44, %v2348_v46 }
 0x324   : > { %v1787_v15 = vpop.f32.mrf.mxu2 }
 0x325   : > { %v1837_v11 = vadd.f32 %v1787_v15, %v1683_v32  ;;  %v2424_v28 = vmax.f32 %v2388_v41, 0.0 }
 0x326   : > { %v2070_v59 = vpop.f32.mrf.mxu3  ;;  %v2558_v4 = vpop.f32.mrf.mxu1 }
 0x327   : > { %v2117_v31 = vadd.f32 %v2067_v30, %v1837_v11  ;;  %v2559_v52 = vadd.f32 %v4121_v42, %v2558_v4  ;;  %v2302_v54 = vpop.f32.mrf.mxu0 }
 0x329   : > { %v2349_v50 = vadd.f32 %v2299_v0, %v2117_v31  ;;  %2636 = vst.msk [vmem:[%s4127_s30 + $0x48] sm:$0xff] %vm2626_vm9, %v2559_v52 }
 0x32b   : > { %v2389_v56 = vadd.f32 %v3989_v44, %v2349_v50 }
 0x32c   : > { %v1790_v60 = vpop.f32.mrf.mxu2 }
 0x32d   : > { %v2425_v34 = vmax.f32 %v2389_v56, 0.0  ;;  %v1838_v14 = vadd.f32 %v1790_v60, %v3921_v16  ;;  %v4487_v60 = vld [vmem:[#allocation11_spill] sm:$0xff] }
 0x32e   : > { %v2072_v40 = vpop.f32.mrf.mxu3  ;;  %v2561_v35 = vpop.f32.mrf.mxu1 }
 0x32f   : > { %v2562_v51 = vadd.f32 %v4121_v42, %v2561_v35  ;;  %v2304_v33 = vpop.f32.mrf.mxu0  ;;  %v2447_v47 = vpack.c.bf16 %v2425_v34, %v2424_v28  ;;  %v2118_v10 = vadd.f32 %v2070_v59, %v1838_v14  ;;  %v4488_v28 = vld [vmem:[#allocation28_spill] sm:$0xff] }
 0x330   : > { %v1689_v34 = vadd.f32 %v4488_v28, %v4487_v60 }
 0x331   : > { %2637 = vst.msk [vmem:[%s4127_s30 + $0x50] sm:$0xff] %vm2626_vm9, %v2562_v51  ;;  %2988 = vmatmul.msk.bf16.gmra.mxu1 %vm2472_vm8, %v2447_v47  ;;  %v2350_v20 = vadd.f32 %v2302_v54, %v2118_v10 }
 0x333   : > { %v2390_v21 = vadd.f32 %v3989_v44, %v2350_v20 }
 0x334   : > { %v1792_v12 = vpop.f32.mrf.mxu2 }
 0x335   : > { %v1839_v63 = vadd.f32 %v1792_v12, %v1685_v24  ;;  %v2426_v43 = vmax.f32 %v2390_v21, 0.0 }
 0x336   : > { %v2075_v1 = vpop.f32.mrf.mxu3  ;;  %v2563_v16 = vpop.f32.mrf.mxu1 }
 0x337   : > { %v2119_v6 = vadd.f32 %v2072_v40, %v1839_v63  ;;  %v2564_v26 = vadd.f32 %v4121_v42, %v2563_v16  ;;  %v2307_v22 = vpop.f32.mrf.mxu0 }
 0x339   : > { %v2351_v39 = vadd.f32 %v2304_v33, %v2119_v6  ;;  %2638 = vst.msk [vmem:[%s4127_s30 + $0x58] sm:$0xff] %vm2626_vm9, %v2564_v26 }
 0x33b   : > { %v2391_v61 = vadd.f32 %v3989_v44, %v2351_v39  ;;  %v1691_v39 = vadd.f32 %v4109_v9, %v3979_v37 }
 0x33c   : > { %v1795_v62 = vpop.f32.mrf.mxu2 }
 0x33d   : > { %v2427_v7 = vmax.f32 %v2391_v61, 0.0  ;;  %v1840_v45 = vadd.f32 %v1795_v62, %v4484_v58 }
 0x33e   : > { %v2077_v48 = vpop.f32.mrf.mxu3  ;;  %v2566_v25 = vpop.f32.mrf.mxu1 }
 0x33f   : > { %v2567_v23 = vadd.f32 %v4121_v42, %v2566_v25  ;;  %v2448_v57 = vpack.c.bf16 %v2427_v7, %v2426_v43  ;;  %v2309_v36 = vpop.f32.mrf.mxu0  ;;  %v2120_v38 = vadd.f32 %v2075_v1, %v1840_v45 }
 0x341   : > { %2639 = vst.msk [vmem:[%s4127_s30 + $0x60] sm:$0xff] %vm2626_vm9, %v2567_v23  ;;  %2989 = vmatmul.msk.bf16.gmra.mxu1 %vm2472_vm8, %v2448_v57  ;;  %v2352_v30 = vadd.f32 %v2307_v22, %v2120_v38 }
 0x343   : > { %v2392_v13 = vadd.f32 %v3989_v44, %v2352_v30 }
 0x344   : > { %v1797_v19 = vpop.f32.mrf.mxu2 }
 0x345   : > { %v1841_v55 = vadd.f32 %v1797_v19, %v1687_v53  ;;  %v2428_v59 = vmax.f32 %v2392_v13, 0.0 }
 0x346   : > { %v2568_v8 = vpop.f32.mrf.mxu1  ;;  %v2080_v29 = vpop.f32.mrf.mxu3 }
 0x347   : > { %v2121_v0 = vadd.f32 %v2077_v48, %v1841_v55  ;;  %v2569_v2 = vadd.f32 %v4121_v42, %v2568_v8  ;;  %v2312_v15 = vpop.f32.mrf.mxu0 }
 0x349   : > { %v2353_v32 = vadd.f32 %v2309_v36, %v2121_v0  ;;  %2640 = vst.msk [vmem:[%s4127_s30 + $0x68] sm:$0xff] %vm2626_vm9, %v2569_v2 }
 0x34b   : > { %v2393_v46 = vadd.f32 %v3989_v44, %v2353_v32 }
 0x34c   : > { %v1800_v11 = vpop.f32.mrf.mxu2 }
 0x34d   : > { %v2429_v4 = vmax.f32 %v2393_v46, 0.0  ;;  %v1842_v31 = vadd.f32 %v1800_v11, %v3953_v49 }
 0x34e   : > { %v2571_v52 = vpop.f32.mrf.mxu1  ;;  %v2082_v56 = vpop.f32.mrf.mxu3 }
 0x34f   : > { %v2572_v54 = vadd.f32 %v4121_v42, %v2571_v52  ;;  %v2449_v41 = vpack.c.bf16 %v2429_v4, %v2428_v59  ;;  %v2122_v50 = vadd.f32 %v2080_v29, %v1842_v31  ;;  %v2314_v14 = vpop.f32.mrf.mxu0 }
 0x351   : > { %2641 = vst.msk [vmem:[%s4127_s30 + $0x70] sm:$0xff] %vm2626_vm9, %v2572_v54  ;;  %2990 = vmatmul.msk.bf16.gmra.mxu1 %vm2472_vm8, %v2449_v41  ;;  %v2354_v35 = vadd.f32 %v2312_v15, %v2122_v50 }
 0x353   : > { %v2394_v10 = vadd.f32 %v3989_v44, %v2354_v35 }
 0x354   : > { %v1802_v40 = vpop.f32.mrf.mxu2 }
 0x355   : > { %v1843_v51 = vadd.f32 %v1802_v40, %v1689_v34  ;;  %v2430_v20 = vmax.f32 %v2394_v10, 0.0 }
 0x356   : > { %v2573_v33 = vpop.f32.mrf.mxu1  ;;  %v2085_v24 = vpop.f32.mrf.mxu3 }
 0x357   : > { %v2123_v49 = vadd.f32 %v2082_v56, %v1843_v51  ;;  %v2574_v47 = vadd.f32 %v4121_v42, %v2573_v33  ;;  %v2317_v16 = vpop.f32.mrf.mxu0 }
 0x359   : > { %v2355_v18 = vadd.f32 %v2314_v14, %v2123_v49  ;;  %2642 = vst.msk [vmem:[%s4127_s30 + $0x78] sm:$0xff] %vm2626_vm9, %v2574_v47 }
 0x35b   : > { %v2395_v27 = vadd.f32 %v3989_v44, %v2355_v18 }
 0x35c   : > { %v1805_v12 = vpop.f32.mrf.mxu2 }
 0x35d   : > { %v2431_v63 = vmax.f32 %v2395_v27, 0.0  ;;  %v1844_v1 = vadd.f32 %v1805_v12, %v3970_v5 }
 0x35e   : > { %v2576_v6 = vpop.f32.mrf.mxu1  ;;  %v2087_v7 = vpop.f32.mrf.mxu3 }
 0x35f   : > { %v2577_v26 = vadd.f32 %v4121_v42, %v2576_v6  ;;  %v2450_v22 = vpack.c.bf16 %v2431_v63, %v2430_v20  ;;  %v2124_v21 = vadd.f32 %v2085_v24, %v1844_v1  ;;  %v2319_v48 = vpop.f32.mrf.mxu0 }
 0x361   : > { %2643 = vst.msk [vmem:[%s4127_s30 + $0x80] sm:$0xff] %vm2626_vm9, %v2577_v26  ;;  %2991 = vmatmul.msk.bf16.gmra.mxu1 %vm2472_vm8, %v2450_v22  ;;  %v2356_v62 = vadd.f32 %v2317_v16, %v2124_v21 }
 0x363   : > { %v2396_v25 = vadd.f32 %v3989_v44, %v2356_v62 }
 0x364   : > { %v1807_v61 = vpop.f32.mrf.mxu2 }
 0x365   : > { %v1845_v43 = vadd.f32 %v1807_v61, %v1691_v39  ;;  %v2432_v37 = vmax.f32 %v2396_v25, 0.0 }
 0x366   : > { %v2578_v5 = vpop.f32.mrf.mxu1 }
 0x367   : > { %v2125_v58 = vadd.f32 %v2087_v7, %v1845_v43  ;;  %v2579_v45 = vadd.f32 %v4121_v42, %v2578_v5 }
 0x369   : > { %v2357_v23 = vadd.f32 %v2319_v48, %v2125_v58  ;;  %2644 = vst.msk [vmem:[%s4127_s30 + $0x88] sm:$0xff] %vm2626_vm9, %v2579_v45 }
 0x36b   : > { %v2397_v57 = vadd.f32 %v3989_v44, %v2357_v23 }
 0x36d   : > { %v2433_v9 = vmax.f32 %v2397_v57, 0.0 }
 0x36e   : > { %v2581_v36 = vpop.f32.mrf.mxu1 }
 0x36f   : > { %v2582_v38 = vadd.f32 %v4121_v42, %v2581_v36  ;;  %v2451_v17 = vpack.c.bf16 %v2433_v9, %v2432_v37 }
 0x371   : > { %2645 = vst.msk [vmem:[%s4127_s30 + $0x90] sm:$0xff] %vm2626_vm9, %v2582_v38  ;;  %2992 = vmatmul.msk.bf16.gmra.mxu1 %vm2472_vm8, %v2451_v17 }
 0x376   : > { %v2583_v3 = vpop.f32.mrf.mxu1 }
 0x377   : > { %v2584_v53 = vadd.f32 %v4121_v42, %v2583_v3 }
 0x379   : > { %2646 = vst.msk [vmem:[%s4127_s30 + $0x98] sm:$0xff] %vm2626_vm9, %v2584_v53 }
 0x37e   : > { %v2586_v44 = vpop.f32.mrf.mxu1 }
 0x37f   : > { %v2587_v19 = vadd.f32 %v4121_v42, %v2586_v44 }
 0x381   : > { %2647 = vst.msk [vmem:[%s4127_s30 + $0xa0] sm:$0xff] %vm2626_vm9, %v2587_v19 }
 0x386   : > { %v2588_v30 = vpop.f32.mrf.mxu1 }
 0x387   : > { %v2589_v55 = vadd.f32 %v4121_v42, %v2588_v30 }
 0x389   : > { %2648 = vst.msk [vmem:[%s4127_s30 + $0xa8] sm:$0xff] %vm2626_vm9, %v2589_v55 }
 0x38e   : > { %v2591_v8 = vpop.f32.mrf.mxu1 }
 0x38f   : > { %v2592_v0 = vadd.f32 %v4121_v42, %v2591_v8 }
 0x391   : > { %2649 = vst.msk [vmem:[%s4127_s30 + $0xb0] sm:$0xff] %vm2626_vm9, %v2592_v0 }
 0x396   : > { %v2593_v2 = vpop.f32.mrf.mxu1 }
 0x397   : > { %v2594_v29 = vadd.f32 %v4121_v42, %v2593_v2 }
 0x399   : > { %2650 = vst.msk [vmem:[%s4127_s30 + $0xb8] sm:$0xff] %vm2626_vm9, %v2594_v29 }
 0x39e   : > { %v2596_v13 = vpop.f32.mrf.mxu1 }
 0x39f   : > { %v2597_v32 = vadd.f32 %v4121_v42, %v2596_v13 }
 0x3a1   : > { %2651 = vst.msk [vmem:[%s4127_s30 + $0xc0] sm:$0xff] %vm2626_vm9, %v2597_v32 }
 0x3a6   : > { %v2598_v15 = vpop.f32.mrf.mxu1 }
 0x3a7   : > { %v2599_v46 = vadd.f32 %v4121_v42, %v2598_v15 }
 0x3a9   : > { %2652 = vst.msk [vmem:[%s4127_s30 + $0xc8] sm:$0xff] %vm2626_vm9, %v2599_v46 }
 0x3ae   : > { %v2601_v11 = vpop.f32.mrf.mxu1 }
 0x3af   : > { %v2602_v59 = vadd.f32 %v4121_v42, %v2601_v11 }
 0x3b1   : > { %2653 = vst.msk [vmem:[%s4127_s30 + $0xd0] sm:$0xff] %vm2626_vm9, %v2602_v59 }
 0x3b6   : > { %v2603_v4 = vpop.f32.mrf.mxu1 }
 0x3b7   : > { %v2604_v31 = vadd.f32 %v4121_v42, %v2603_v4 }
 0x3b9   : > { %2654 = vst.msk [vmem:[%s4127_s30 + $0xd8] sm:$0xff] %vm2626_vm9, %v2604_v31 }
 0x3be   : > { %v2606_v52 = vpop.f32.mrf.mxu1 }
 0x3bf   : > { %v2607_v54 = vadd.f32 %v4121_v42, %v2606_v52 }
 0x3c1   : > { %2655 = vst.msk [vmem:[%s4127_s30 + $0xe0] sm:$0xff] %vm2626_vm9, %v2607_v54 }
 0x3c6   : > { %v2608_v41 = vpop.f32.mrf.mxu1 }
 0x3c7   : > { %v2609_v50 = vadd.f32 %v4121_v42, %v2608_v41 }
 0x3c9   : > { %2656 = vst.msk [vmem:[%s4127_s30 + $0xe8] sm:$0xff] %vm2626_vm9, %v2609_v50 }
 0x3ce   : > { %v2611_v56 = vpop.f32.mrf.mxu1 }
 0x3cf   : > { %v2612_v60 = vadd.f32 %v4121_v42, %v2611_v56 }
 0x3d1   : > { %2657 = vst.msk [vmem:[%s4127_s30 + $0xf0] sm:$0xff] %vm2626_vm9, %v2612_v60 }
 0x3d6   : > { %v2613_v28 = vpop.f32.mrf.mxu1 }
 0x3d7   : > { %v2614_v34 = vadd.f32 %v4121_v42, %v2613_v28 }
 0x3d9   : > { %2658 = vst.msk [vmem:[%s4127_s30 + $0xf8] sm:$0xff] %vm2626_vm9, %v2614_v34 }
 0x3de   : > { %v2616_v14 = vpop.f32.mrf.mxu1 }
 0x3df   : > { %v2617_v40 = vadd.f32 %v4121_v42, %v2616_v14 }
 0x3e1   : > { %2659 = vst.msk [vmem:[%s4127_s30 + $0x100] sm:$0xff] %vm2626_vm9, %v2617_v40 }
 0x3e6   : > { %v2618_v35 = vpop.f32.mrf.mxu1 }
 0x3e7   : > { %v2619_v51 = vadd.f32 %v4121_v42, %v2618_v35 }
 0x3e9   : > { %2660 = vst.msk [vmem:[%s4127_s30 + $0x108] sm:$0xff] %vm2626_vm9, %v2619_v51 }
 0x3ee   : > { %v2621_v33 = vpop.f32.mrf.mxu1 }
 0x3ef   : > { %v2622_v49 = vadd.f32 %v4121_v42, %v2621_v33 }
 0x3f1   : > { %2661 = vst.msk [vmem:[%s4127_s30 + $0x110] sm:$0xff] %vm2626_vm9, %v2622_v49 }
 0x3f6   : > { %v2623_v47 = vpop.f32.mrf.mxu1 }
 0x3f7   : > { %v2624_v10 = vadd.f32 %v4121_v42, %v2623_v47 }
 0x3f9   : > { %2662 = vst.msk [vmem:[%s4127_s30 + $0x118] sm:$0xff] %vm2626_vm9, %v2624_v10 }
 0x3fa PF: > { %s15_s18 = sadd.s32 1, %s3062_s18  }
 0x3fb   : > { %p12_p4 = scmp.ge.s32.totalorder %s15_s18, 4  }
 0x3fd   :  { %14 = sbr.rel (!%p12_p4) target bundleno = 1 (0x1), region = 78 }

</bundles_post_ra>
